<compile_context>
chip_gen: v7x
topology: tpu7x:2x2x1
jax: 0.10.0
libtpu: 0.0.40
codegen_flags: <defaults>
</compile_context>

<pallas_src>
import functools

import numpy as np
import jax
import jax.numpy as jnp
from jax import lax
from jax.experimental import pallas as pl
from jax.experimental.pallas import tpu as pltpu


# --------------------------------------------------------------------------
# Generation-aware knobs (VMEM limit, default row tile).
# --------------------------------------------------------------------------
def _vmem_capacity_bytes():
    try:
        info = pltpu.get_tpu_info()
        cap = (getattr(info, "vmem_capacity_bytes", None)
               or getattr(info, "vmem_size_bytes", None))
        if cap:
            return int(cap)
    except Exception:
        pass
    # Conservative fallback: assume the smallest (v7x-class) 64 MiB VMEM.
    return 64 * 1024 * 1024


_VMEM_CAP = _vmem_capacity_bytes()
# Leave headroom for compiler-internal scratch (~75% of physical, cap 96 MiB).
_VMEM_LIMIT = min(96 * 1024 * 1024, (_VMEM_CAP * 3) // 4)
# Bigger row tiles on 128 MiB parts (v5e/v6e); keep 512 on 64 MiB parts (v7x).
_DEFAULT_TM = 1024 if _VMEM_CAP >= 96 * 1024 * 1024 else 512


def _cparams(num_grid_axes):
    return pltpu.CompilerParams(
        dimension_semantics=("parallel",) * num_grid_axes,
        vmem_limit_bytes=int(_VMEM_LIMIT),
    )


def _itemsize(dtype):
    return np.dtype(dtype).itemsize


# ----------------------------------------------------------------------------
# Pallas kernel: fused (x @ w) * scale + shift [+ residual | + proj-shortcut]
# -> optional ReLU.  Activations are cast to bf16 *inside* the kernel.
# ----------------------------------------------------------------------------
def _make_fused_kernel(apply_relu: bool, mode: str):
    """mode in {'none', 'add', 'proj'}."""

    def kernel(x_ref, w_ref, scale_ref, shift_ref, *rest):
        if mode == "add":
            res_ref, o_ref = rest
        elif mode == "proj":
            xs_ref, ws_ref, ss_ref, bs_ref, o_ref = rest
        else:
            (o_ref,) = rest

        # In-kernel bf16 cast (VPU, hidden under the MXU); weights already bf16.
        x = x_ref[...].astype(jnp.bfloat16)
        acc = jnp.dot(x, w_ref[...], preferred_element_type=jnp.float32)
        out = acc * scale_ref[...] + shift_ref[...]

        if mode == "add":
            out = out + res_ref[...].astype(jnp.float32)
        elif mode == "proj":
            xs = xs_ref[...].astype(jnp.bfloat16)
            acc2 = jnp.dot(xs, ws_ref[...], preferred_element_type=jnp.float32)
            out = out + (acc2 * ss_ref[...] + bs_ref[...])

        if apply_relu:
            out = jnp.maximum(out, 0.0)
        o_ref[...] = out.astype(o_ref.dtype)

    return kernel


def _pick_row_tile(rows, tm):
    """Largest 8-aligned tile <= tm, keeping >=2 grid steps when possible."""
    tm = min(tm, rows)
    if rows > 8 and pl.cdiv(rows, tm) < 2:
        half = (rows + 1) // 2
        tm = max(8, ((half + 7) // 8) * 8)
    return tm


def matmul_bn_act(x2d, w_bf16, scale, shift, *, relu=True, residual=None,
                  shortcut=None, out_dtype=jnp.float32, tm=None):
    """y = act((x2d @ w) * scale + shift (+ residual | + (xs@ws)*ss+bs))."""
    rows, cin = x2d.shape
    cout = w_bf16.shape[1]
    tm = _pick_row_tile(rows, _DEFAULT_TM if tm is None else tm)
    grid = (pl.cdiv(rows, tm),)

    args = [x2d, w_bf16.astype(jnp.bfloat16),
            scale.astype(jnp.float32), shift.astype(jnp.float32)]
    in_specs = [
        pl.BlockSpec((tm, cin), lambda i: (i, 0)),
        pl.BlockSpec((cin, cout), lambda i: (0, 0)),
        pl.BlockSpec((1, cout), lambda i: (0, 0)),
        pl.BlockSpec((1, cout), lambda i: (0, 0)),
    ]

    flops = 2 * rows * cin * cout
    bytes_accessed = (x2d.size * _itemsize(x2d.dtype) + 2 * cin * cout
                      + 8 * cout + rows * cout * _itemsize(out_dtype))

    mode = "none"
    if residual is not None:
        mode = "add"
        args.append(residual)
        in_specs.append(pl.BlockSpec((tm, cout), lambda i: (i, 0)))
        bytes_accessed += residual.size * _itemsize(residual.dtype)
    elif shortcut is not None:
        mode = "proj"
        xs, ws, ss, bs = shortcut
        cin_s = xs.shape[1]
        args += [xs, ws.astype(jnp.bfloat16),
                 ss.astype(jnp.float32), bs.astype(jnp.float32)]
        in_specs += [
            pl.BlockSpec((tm, cin_s), lambda i: (i, 0)),
            pl.BlockSpec((cin_s, cout), lambda i: (0, 0)),
            pl.BlockSpec((1, cout), lambda i: (0, 0)),
            pl.BlockSpec((1, cout), lambda i: (0, 0)),
        ]
        flops += 2 * rows * cin_s * cout
        bytes_accessed += (xs.size * _itemsize(xs.dtype)
                           + 2 * cin_s * cout + 8 * cout)

    kernel = _make_fused_kernel(relu, mode)
    return pl.pallas_call(
        kernel,
        out_shape=jax.ShapeDtypeStruct((rows, cout), out_dtype),
        grid=grid,
        in_specs=in_specs,
        out_specs=pl.BlockSpec((tm, cout), lambda i: (i, 0)),
        compiler_params=_cparams(1),
        cost_estimate=pl.CostEstimate(flops=int(flops), transcendentals=0,
                                      bytes_accessed=int(bytes_accessed)),
    )(*args)


# ----------------------------------------------------------------------------
# Pallas kernel: 3x3 conv (stride s, pad 1) + BN + ReLU.
# Row-tiled grid; per tile a VMEM im2col slab + ONE wide K=9*C MXU dot.
# ----------------------------------------------------------------------------
def conv3x3_bn_relu(h_nhwc, w9c_bf16, scale, shift, stride,
                    out_dtype=jnp.bfloat16, th=None):
    N, H, W, C = h_nhwc.shape
    cout = w9c_bf16.shape[1]
    s = stride
    Ho = (H - 1) // s + 1
    Wo = (W - 1) // s + 1
    halo = 2 // s  # extra phase rows/cols read beyond a tile's own rows

    # Row tile: keep the (th*Wo, cout) f32 dot result near-register-resident
    # (~<=256 KiB), and >=2 row tiles for pipelining / megacore balance.
    if th is None:
        th = max(1, (256 * 1024) // max(1, Wo * cout * 4))
    th = max(1, min(th, Ho))
    if Ho > 1 and pl.cdiv(Ho, th) < 2:
        th = (Ho + 1) // 2
    # Keep the flattened output block's sublane dim (th*Wo) 8-aligned.
    if th < Ho and (th * Wo) % 8 != 0:
        t = th
        while t < Ho and (t * Wo) % 8 != 0:
            t += 1
        th = t if (t * Wo) % 8 == 0 and t < Ho else Ho
    n_rt = pl.cdiv(Ho, th)

    # Zero-pad (pad=1) + stride-phase decomposition so each 3x3 tap reads a
    # contiguous (th, Wo) window of one phase.  Single bf16 HBM pass.
    Hp, Wp = H + 2, W + 2
    pad_h, pad_w = (-Hp) % s, (-Wp) % s
    hp = jnp.pad(h_nhwc, ((0, 0), (1, 1 + pad_h), (1, 1 + pad_w), (0, 0)))
    Hps, Wps = (Hp + pad_h) // s, (Wp + pad_w) // s
    hph = hp.reshape(N, Hps, s, Wps, s, C).transpose(0, 2, 4, 1, 3, 5)
    hph = hph.reshape(N, s * s, Hps, Wps, C)

    # Pad rows/cols so the ragged last tile's dynamic slices stay in-bounds.
    need_rows = n_rt * th + halo
    need_cols = Wo + halo
    if need_rows > Hps or need_cols > Wps:
        hph = jnp.pad(hph, ((0, 0), (0, 0),
                            (0, max(0, need_rows - Hps)),
                            (0, max(0, need_cols - Wps)), (0, 0)))
        Hps, Wps = max(Hps, need_rows), max(Wps, need_cols)

    hph = hph.astype(jnp.bfloat16)
    w2 = w9c_bf16.astype(jnp.bfloat16)          # (9*C, cout), (kh, kw, c) order
    scale = scale.astype(jnp.float32)
    shift = shift.astype(jnp.float32)

    def kernel(x_ref, w_ref, sc_ref, sh_ref, o_ref):
        r = pl.program_id(1)
        row0 = r * th
        taps = []
        for kh in range(3):
            di, p = kh // s, kh % s
            for kw in range(3):
                dj, q = kw // s, kw % s
                # Contiguous (th, Wo, C) window of phase (p, q).
                taps.append(x_ref[0, p * s + q, pl.ds(row0 + di, th),
                                  dj:dj + Wo, :])
        # Tile-local im2col slab -> one wide MXU dot (K = 9*C).
        slab = jnp.concatenate(taps, axis=-1).reshape(th * Wo, 9 * C)
        acc = jnp.dot(slab, w_ref[...], preferred_element_type=jnp.float32)
        out = jnp.maximum(acc * sc_ref[...] + sh_ref[...], 0.0)
        o_ref[0] = out.astype(o_ref.dtype)

    flops = 2 * N * Ho * Wo * 9 * C * cout
    bytes_accessed = (hph.size * 2 + w2.size * 2 + 8 * cout
                      + N * Ho * Wo * cout * _itemsize(out_dtype))

    out = pl.pallas_call(
        kernel,
        out_shape=jax.ShapeDtypeStruct((N, Ho * Wo, cout), out_dtype),
        grid=(N, n_rt),
        in_specs=[
            # Whole (padded, phase-split) image: block index is constant in r,
            # so it stays VMEM-resident across the row tiles of one image.
            pl.BlockSpec((1, s * s, Hps, Wps, C), lambda n, r: (n, 0, 0, 0, 0)),
            pl.BlockSpec((9 * C, cout), lambda n, r: (0, 0)),
            pl.BlockSpec((1, cout), lambda n, r: (0, 0)),
            pl.BlockSpec((1, cout), lambda n, r: (0, 0)),
        ],
        out_specs=pl.BlockSpec((1, th * Wo, cout), lambda n, r: (n, r, 0)),
        compiler_params=_cparams(2),
        cost_estimate=pl.CostEstimate(flops=int(flops), transcendentals=0,
                                      bytes_accessed=int(bytes_accessed)),
    )(hph, w2, scale, shift)
    return out.reshape(N * Ho * Wo, cout), Ho, Wo


# ----------------------------------------------------------------------------
# Parameter construction (deterministic, synthetic) — inference-mode BN folded
# ----------------------------------------------------------------------------
def _bn_fold(gamma, beta, mean, var, eps=1e-5):
    scale = gamma / jnp.sqrt(var + eps)
    shift = beta - mean * scale
    return (scale.reshape(1, -1).astype(jnp.float32),
            shift.reshape(1, -1).astype(jnp.float32))


def init_bottleneck_params(key, in_planes, planes, stride):
    expansion = 4
    ks = jax.random.split(key, 8)
    p = {}
    # Weights stored in bf16 once (MXU-native); activations cast in-kernel.
    p["w1"] = (0.1 * jax.random.normal(ks[0], (in_planes, planes), jnp.float32)
               ).astype(jnp.bfloat16)
    p["w2"] = (0.1 * jax.random.normal(ks[1], (3 * 3 * planes, planes), jnp.float32)
               ).astype(jnp.bfloat16)
    p["w3"] = (0.1 * jax.random.normal(ks[2], (planes, expansion * planes), jnp.float32)
               ).astype(jnp.bfloat16)

    def bn_params(k, c):
        k1, k2, k3, k4 = jax.random.split(k, 4)
        gamma = 1.0 + 0.1 * jax.random.normal(k1, (c,), jnp.float32)
        beta = 0.1 * jax.random.normal(k2, (c,), jnp.float32)
        mean = 0.1 * jax.random.normal(k3, (c,), jnp.float32)
        var = jnp.abs(1.0 + 0.1 * jax.random.normal(k4, (c,), jnp.float32))
        return _bn_fold(gamma, beta, mean, var)

    p["s1"], p["b1"] = bn_params(ks[3], planes)
    p["s2"], p["b2"] = bn_params(ks[4], planes)
    p["s3"], p["b3"] = bn_params(ks[5], expansion * planes)

    if stride != 1 or in_planes != expansion * planes:
        p["ws"] = (0.1 * jax.random.normal(
            ks[6], (in_planes, expansion * planes), jnp.float32)).astype(jnp.bfloat16)
        p["ss"], p["bs"] = bn_params(ks[7], expansion * planes)
    return p


# ----------------------------------------------------------------------------
# Bottleneck forward (Pallas kernels for every conv/BN/ReLU hot path)
# ----------------------------------------------------------------------------
def bottleneck_forward(x_nchw, params, in_planes, planes, stride):
    expansion = 4
    x = jnp.transpose(x_nchw, (0, 2, 3, 1)).astype(jnp.float32)  # NHWC
    N, H, W, Cin = x.shape
    assert Cin == in_planes

    # conv1 (1x1) + bn1 + relu — f32 in (cast to bf16 in-kernel), bf16 out.
    h1 = matmul_bn_act(x.reshape(N * H * W, Cin), params["w1"],
                       params["s1"], params["b1"], relu=True,
                       out_dtype=jnp.bfloat16)
    h1 = h1.reshape(N, H, W, planes)

    # conv2 (3x3, stride, pad=1) + bn2 + relu — row-tiled, one K=9C dot/tile.
    h2, Ho, Wo = conv3x3_bn_relu(h1, params["w2"], params["s2"], params["b2"],
                                 stride, out_dtype=jnp.bfloat16)

    # conv3 (1x1) + bn3 + shortcut + relu — shortcut fused into the kernel.
    if stride != 1 or in_planes != expansion * planes:
        # Strided subsample stays f32; bf16 cast happens in-kernel.
        xs = x[:, ::stride, ::stride, :].reshape(N * Ho * Wo, Cin)
        out = matmul_bn_act(h2, params["w3"], params["s3"], params["b3"],
                            relu=True,
                            shortcut=(xs, params["ws"], params["ss"], params["bs"]))
    else:
        res = x.reshape(N * Ho * Wo, Cin)
        out = matmul_bn_act(h2, params["w3"], params["s3"], params["b3"],
                            relu=True, residual=res)

    out = out.reshape(N, Ho, Wo, expansion * planes)
    return jnp.transpose(out, (0, 3, 1, 2))  # back to NCHW


# ----------------------------------------------------------------------------
# Pure-JAX reference (f32 lax conv) for a sanity check
# ----------------------------------------------------------------------------
def bottleneck_reference(x_nchw, params, in_planes, planes, stride):
    expansion = 4
    x = jnp.transpose(x_nchw, (0, 2, 3, 1)).astype(jnp.float32)
    dn = ("NHWC", "HWIO", "NHWC")

    def conv(inp, w_hwio, s):
        return lax.conv_general_dilated(
            inp, w_hwio, window_strides=(s, s),
            padding="VALID" if w_hwio.shape[0] == 1 else ((1, 1), (1, 1)),
            dimension_numbers=dn)

    w1 = params["w1"].astype(jnp.float32).reshape(1, 1, in_planes, planes)
    w2 = params["w2"].astype(jnp.float32).reshape(3, 3, planes, planes)
    w3 = params["w3"].astype(jnp.float32).reshape(1, 1, planes, expansion * planes)

    h = jnp.maximum(conv(x, w1, 1) * params["s1"] + params["b1"], 0.0)
    h = jnp.maximum(conv(h, w2, stride) * params["s2"] + params["b2"], 0.0)
    h = conv(h, w3, 1) * params["s3"] + params["b3"]
    if stride != 1 or in_planes != expansion * planes:
        ws = params["ws"].astype(jnp.float32).reshape(1, 1, in_planes, expansion * planes)
        sc = conv(x, ws, stride) * params["ss"] + params["bs"]
    else:
        sc = x
    out = jnp.maximum(h + sc, 0.0)
    return jnp.transpose(out, (0, 3, 1, 2))


# ----------------------------------------------------------------------------
if __name__ == "__main__":
    key = jax.random.PRNGKey(0)

    def run_case(kcase, in_planes, planes, stride, N, H, W):
        kx, kp = jax.random.split(kcase)
        x = jax.random.normal(kx, (N, in_planes, H, W), jnp.float32)
        params = init_bottleneck_params(kp, in_planes, planes, stride)
        fwd = jax.jit(functools.partial(bottleneck_forward, in_planes=in_planes,
                                        planes=planes, stride=stride))
        out = jax.block_until_ready(fwd(x, params))
        ref = bottleneck_reference(x, params, in_planes, planes, stride)
        Ho = (H - 1) // stride + 1
        Wo = (W - 1) // stride + 1
        assert out.shape == (N, 4 * planes, Ho, Wo), out.shape
        # bf16 MXU inputs (f32 accumulation) -> loosened tolerance vs f32 ref.
        err = float(jnp.max(jnp.abs(out.astype(jnp.float32) - ref)))
        assert jnp.allclose(out, ref, atol=3e-2, rtol=3e-2), err

    k1, k2 = jax.random.split(key)
    # Downsample block (projection shortcut, stride 2).
    run_case(k1, in_planes=4, planes=4, stride=2, N=2, H=16, W=16)
    # Identity block (stride 1, in_planes == 4*planes).
    run_case(k2, in_planes=16, planes=4, stride=1, N=2, H=16, W=16)

    print("KERNEL_OK")
</pallas_src>

<mosaic_0001>
module attributes {stable_mosaic.version = 11 : i64} {
  func.func @kernel(%arg0: i32, %arg1: memref<256x4xf32, #tpu.memory_space<vmem>>, %arg2: memref<4x4xbf16, #tpu.memory_space<vmem>>, %arg3: memref<1x4xf32, #tpu.memory_space<vmem>>, %arg4: memref<1x4xf32, #tpu.memory_space<vmem>>, %arg5: memref<256x4xbf16, #tpu.memory_space<vmem>>) attributes {dimension_semantics = [#tpu.dimension_semantics<parallel>], iteration_bounds = array<i64: 2>, scalar_prefetch = 0 : i64, scratch_operands = 0 : i64, tpu.core_type = #tpu.core_type<tc>, window_params = [{transform_indices = @transform_0, window_bounds = array<i64: 256, 4>}, {pipeline_mode = #tpu.pipeline_mode<synchronous>, transform_indices = @transform_1, window_bounds = array<i64: 4, 4>}, {pipeline_mode = #tpu.pipeline_mode<synchronous>, transform_indices = @transform_2, window_bounds = array<i64: 1, 4>}, {pipeline_mode = #tpu.pipeline_mode<synchronous>, transform_indices = @transform_3, window_bounds = array<i64: 1, 4>}, {transform_indices = @transform_4, window_bounds = array<i64: 256, 4>}]} {
    %c0 = arith.constant 0 : index
    %c0_0 = arith.constant 0 : index
    %0 = vector.load %arg1[%c0, %c0_0] : memref<256x4xf32, #tpu.memory_space<vmem>>, vector<256x4xf32>
    %1 = arith.truncf %0 : vector<256x4xf32> to vector<256x4xbf16>
    %c0_1 = arith.constant 0 : index
    %c0_2 = arith.constant 0 : index
    %2 = vector.load %arg2[%c0_1, %c0_2] : memref<4x4xbf16, #tpu.memory_space<vmem>>, vector<4x4xbf16>
    %cst = arith.constant dense<0.000000e+00> : vector<256x4xf32>
    %3 = tpu.matmul %1, %2, %cst {dimension_numbers = #tpu.dot_dimension_numbers<[1], [0], [0], [1], [0, 0, 1, 1], [], []>} : vector<256x4xbf16>, vector<4x4xbf16>, vector<256x4xf32> -> vector<256x4xf32>
    %c0_3 = arith.constant 0 : index
    %c0_4 = arith.constant 0 : index
    %4 = vector.load %arg3[%c0_3, %c0_4] : memref<1x4xf32, #tpu.memory_space<vmem>>, vector<1x4xf32>
    %5 = vector.broadcast %4 : vector<1x4xf32> to vector<256x4xf32>
    %6 = arith.mulf %3, %5 : vector<256x4xf32>
    %c0_5 = arith.constant 0 : index
    %c0_6 = arith.constant 0 : index
    %7 = vector.load %arg4[%c0_5, %c0_6] : memref<1x4xf32, #tpu.memory_space<vmem>>, vector<1x4xf32>
    %8 = vector.broadcast %7 : vector<1x4xf32> to vector<256x4xf32>
    %9 = arith.addf %6, %8 : vector<256x4xf32>
    %cst_7 = arith.constant 0.000000e+00 : f32
    %10 = vector.broadcast %cst_7 : f32 to vector<256x4xf32>
    %11 = arith.maximumf %9, %10 : vector<256x4xf32>
    %12 = arith.truncf %11 : vector<256x4xf32> to vector<256x4xbf16>
    %c0_8 = arith.constant 0 : index
    %c0_9 = arith.constant 0 : index
    %13 = vector.load %arg5[%c0_8, %c0_9] : memref<256x4xbf16, #tpu.memory_space<vmem>>, vector<256x4xbf16>
    tpu.vector_store %arg5[%c0_8, %c0_9], %12 {strides = array<i32>} : memref<256x4xbf16, #tpu.memory_space<vmem>>, vector<256x4xbf16>,
    return
  }
  func.func @transform_0(%arg0: i32) -> (i32, i32) {
    %c0_i32 = arith.constant 0 : i32
    %c0_i32_0 = arith.constant 0 : i32
    return %arg0, %c0_i32 : i32, i32
  }
  func.func @transform_1(%arg0: i32) -> (i32, i32) {
    %c0_i32 = arith.constant 0 : i32
    %c0_i32_0 = arith.constant 0 : i32
    %c0_i32_1 = arith.constant 0 : i32
    return %c0_i32, %c0_i32_0 : i32, i32
  }
  func.func @transform_2(%arg0: i32) -> (i32, i32) {
    %c0_i32 = arith.constant 0 : i32
    %c0_i32_0 = arith.constant 0 : i32
    %c0_i32_1 = arith.constant 0 : i32
    return %c0_i32, %c0_i32_0 : i32, i32
  }
  func.func @transform_3(%arg0: i32) -> (i32, i32) {
    %c0_i32 = arith.constant 0 : i32
    %c0_i32_0 = arith.constant 0 : i32
    %c0_i32_1 = arith.constant 0 : i32
    return %c0_i32, %c0_i32_0 : i32, i32
  }
  func.func @transform_4(%arg0: i32) -> (i32, i32) {
    %c0_i32 = arith.constant 0 : i32
    %c0_i32_0 = arith.constant 0 : i32
    return %arg0, %c0_i32 : i32, i32
  }
}

module attributes {stable_mosaic.version = 11 : i64} {
  func.func @kernel(%arg0: i32, %arg1: i32, %arg2: memref<1x4x9x9x4xbf16, #tpu.memory_space<vmem>>, %arg3: memref<36x4xbf16, #tpu.memory_space<vmem>>, %arg4: memref<1x4xf32, #tpu.memory_space<vmem>>, %arg5: memref<1x4xf32, #tpu.memory_space<vmem>>, %arg6: memref<1x32x4xbf16, #tpu.memory_space<vmem>>) attributes {dimension_semantics = [#tpu.dimension_semantics<parallel>, #tpu.dimension_semantics<parallel>], iteration_bounds = array<i64: 2, 2>, scalar_prefetch = 0 : i64, scratch_operands = 0 : i64, tpu.core_type = #tpu.core_type<tc>, window_params = [{transform_indices = @transform_0, window_bounds = array<i64: 1, 4, 9, 9, 4>}, {pipeline_mode = #tpu.pipeline_mode<synchronous>, transform_indices = @transform_1, window_bounds = array<i64: 36, 4>}, {pipeline_mode = #tpu.pipeline_mode<synchronous>, transform_indices = @transform_2, window_bounds = array<i64: 1, 4>}, {pipeline_mode = #tpu.pipeline_mode<synchronous>, transform_indices = @transform_3, window_bounds = array<i64: 1, 4>}, {transform_indices = @transform_4, window_bounds = array<i64: 1, 32, 4>}]} {
    %c4_i32 = arith.constant 4 : i32
    %0 = arith.muli %arg1, %c4_i32 : i32
    %c0_i32 = arith.constant 0 : i32
    %1 = arith.addi %0, %c0_i32 : i32
    %c0 = arith.constant 0 : index
    %c0_0 = arith.constant 0 : index
    %2 = arith.index_cast %1 : i32 to index
    %c0_1 = arith.constant 0 : index
    %c0_2 = arith.constant 0 : index
    %3 = vector.load %arg2[%c0, %c0_0, %2, %c0_1, %c0_2] : memref<1x4x9x9x4xbf16, #tpu.memory_space<vmem>>, vector<1x1x4x8x4xbf16>
    %4 = vector.shape_cast %3 : vector<1x1x4x8x4xbf16> to vector<4x8x4xbf16>
    %c0_i32_3 = arith.constant 0 : i32
    %5 = arith.addi %0, %c0_i32_3 : i32
    %c0_4 = arith.constant 0 : index
    %c1 = arith.constant 1 : index
    %6 = arith.index_cast %5 : i32 to index
    %c0_5 = arith.constant 0 : index
    %c0_6 = arith.constant 0 : index
    %7 = vector.load %arg2[%c0_4, %c1, %6, %c0_5, %c0_6] : memref<1x4x9x9x4xbf16, #tpu.memory_space<vmem>>, vector<1x1x4x8x4xbf16>
    %8 = vector.shape_cast %7 : vector<1x1x4x8x4xbf16> to vector<4x8x4xbf16>
    %c0_i32_7 = arith.constant 0 : i32
    %9 = arith.addi %0, %c0_i32_7 : i32
    %c0_8 = arith.constant 0 : index
    %c0_9 = arith.constant 0 : index
    %10 = arith.index_cast %9 : i32 to index
    %c1_10 = arith.constant 1 : index
    %c0_11 = arith.constant 0 : index
    %11 = vector.load %arg2[%c0_8, %c0_9, %10, %c1_10, %c0_11] : memref<1x4x9x9x4xbf16, #tpu.memory_space<vmem>>, vector<1x1x4x8x4xbf16>
    %12 = vector.shape_cast %11 : vector<1x1x4x8x4xbf16> to vector<4x8x4xbf16>
    %c0_i32_12 = arith.constant 0 : i32
    %13 = arith.addi %0, %c0_i32_12 : i32
    %c0_13 = arith.constant 0 : index
    %c2 = arith.constant 2 : index
    %14 = arith.index_cast %13 : i32 to index
    %c0_14 = arith.constant 0 : index
    %c0_15 = arith.constant 0 : index
    %15 = vector.load %arg2[%c0_13, %c2, %14, %c0_14, %c0_15] : memref<1x4x9x9x4xbf16, #tpu.memory_space<vmem>>, vector<1x1x4x8x4xbf16>
    %16 = vector.shape_cast %15 : vector<1x1x4x8x4xbf16> to vector<4x8x4xbf16>
    %c0_i32_16 = arith.constant 0 : i32
    %17 = arith.addi %0, %c0_i32_16 : i32
    %c0_17 = arith.constant 0 : index
    %c3 = arith.constant 3 : index
    %18 = arith.index_cast %17 : i32 to index
    %c0_18 = arith.constant 0 : index
    %c0_19 = arith.constant 0 : index
    %19 = vector.load %arg2[%c0_17, %c3, %18, %c0_18, %c0_19] : memref<1x4x9x9x4xbf16, #tpu.memory_space<vmem>>, vector<1x1x4x8x4xbf16>
    %20 = vector.shape_cast %19 : vector<1x1x4x8x4xbf16> to vector<4x8x4xbf16>
    %c0_i32_20 = arith.constant 0 : i32
    %21 = arith.addi %0, %c0_i32_20 : i32
    %c0_21 = arith.constant 0 : index
    %c2_22 = arith.constant 2 : index
    %22 = arith.index_cast %21 : i32 to index
    %c1_23 = arith.constant 1 : index
    %c0_24 = arith.constant 0 : index
    %23 = vector.load %arg2[%c0_21, %c2_22, %22, %c1_23, %c0_24] : memref<1x4x9x9x4xbf16, #tpu.memory_space<vmem>>, vector<1x1x4x8x4xbf16>
    %24 = vector.shape_cast %23 : vector<1x1x4x8x4xbf16> to vector<4x8x4xbf16>
    %c1_i32 = arith.constant 1 : i32
    %25 = arith.addi %0, %c1_i32 : i32
    %c0_25 = arith.constant 0 : index
    %c0_26 = arith.constant 0 : index
    %26 = arith.index_cast %25 : i32 to index
    %c0_27 = arith.constant 0 : index
    %c0_28 = arith.constant 0 : index
    %27 = vector.load %arg2[%c0_25, %c0_26, %26, %c0_27, %c0_28] : memref<1x4x9x9x4xbf16, #tpu.memory_space<vmem>>, vector<1x1x4x8x4xbf16>
    %28 = vector.shape_cast %27 : vector<1x1x4x8x4xbf16> to vector<4x8x4xbf16>
    %c1_i32_29 = arith.constant 1 : i32
    %29 = arith.addi %0, %c1_i32_29 : i32
    %c0_30 = arith.constant 0 : index
    %c1_31 = arith.constant 1 : index
    %30 = arith.index_cast %29 : i32 to index
    %c0_32 = arith.constant 0 : index
    %c0_33 = arith.constant 0 : index
    %31 = vector.load %arg2[%c0_30, %c1_31, %30, %c0_32, %c0_33] : memref<1x4x9x9x4xbf16, #tpu.memory_space<vmem>>, vector<1x1x4x8x4xbf16>
    %32 = vector.shape_cast %31 : vector<1x1x4x8x4xbf16> to vector<4x8x4xbf16>
    %c1_i32_34 = arith.constant 1 : i32
    %33 = arith.addi %0, %c1_i32_34 : i32
    %c0_35 = arith.constant 0 : index
    %c0_36 = arith.constant 0 : index
    %34 = arith.index_cast %33 : i32 to index
    %c1_37 = arith.constant 1 : index
    %c0_38 = arith.constant 0 : index
    %35 = vector.load %arg2[%c0_35, %c0_36, %34, %c1_37, %c0_38] : memref<1x4x9x9x4xbf16, #tpu.memory_space<vmem>>, vector<1x1x4x8x4xbf16>
    %36 = vector.shape_cast %35 : vector<1x1x4x8x4xbf16> to vector<4x8x4xbf16>
    %37 = tpu.concatenate %4, %8, %12, %16, %20, %24, %28, %32, %36 in 2 : vector<4x8x4xbf16>, vector<4x8x4xbf16>, vector<4x8x4xbf16>, vector<4x8x4xbf16>, vector<4x8x4xbf16>, vector<4x8x4xbf16>, vector<4x8x4xbf16>, vector<4x8x4xbf16>, vector<4x8x4xbf16> -> vector<4x8x36xbf16>
    %38 = vector.shape_cast %37 : vector<4x8x36xbf16> to vector<32x36xbf16>
    %c0_39 = arith.constant 0 : index
    %c0_40 = arith.constant 0 : index
    %39 = vector.load %arg3[%c0_39, %c0_40] : memref<36x4xbf16, #tpu.memory_space<vmem>>, vector<36x4xbf16>
    %cst = arith.constant dense<0.000000e+00> : vector<32x4xf32>
    %40 = tpu.matmul %38, %39, %cst {dimension_numbers = #tpu.dot_dimension_numbers<[1], [0], [0], [1], [0, 0, 1, 1], [], []>} : vector<32x36xbf16>, vector<36x4xbf16>, vector<32x4xf32> -> vector<32x4xf32>
    %c0_41 = arith.constant 0 : index
    %c0_42 = arith.constant 0 : index
    %41 = vector.load %arg4[%c0_41, %c0_42] : memref<1x4xf32, #tpu.memory_space<vmem>>, vector<1x4xf32>
    %42 = vector.broadcast %41 : vector<1x4xf32> to vector<32x4xf32>
    %43 = arith.mulf %40, %42 : vector<32x4xf32>
    %c0_43 = arith.constant 0 : index
    %c0_44 = arith.constant 0 : index
    %44 = vector.load %arg5[%c0_43, %c0_44] : memref<1x4xf32, #tpu.memory_space<vmem>>, vector<1x4xf32>
    %45 = vector.broadcast %44 : vector<1x4xf32> to vector<32x4xf32>
    %46 = arith.addf %43, %45 : vector<32x4xf32>
    %cst_45 = arith.constant 0.000000e+00 : f32
    %47 = vector.broadcast %cst_45 : f32 to vector<32x4xf32>
    %48 = arith.maximumf %46, %47 : vector<32x4xf32>
    %49 = arith.truncf %48 : vector<32x4xf32> to vector<32x4xbf16>
    %c0_46 = arith.constant 0 : index
    %c0_47 = arith.constant 0 : index
    %c0_48 = arith.constant 0 : index
    %50 = vector.load %arg6[%c0_46, %c0_47, %c0_48] : memref<1x32x4xbf16, #tpu.memory_space<vmem>>, vector<1x32x4xbf16>
    %51 = vector.shape_cast %50 : vector<1x32x4xbf16> to vector<32x4xbf16>
    %52 = vector.shape_cast %49 : vector<32x4xbf16> to vector<1x32x4xbf16>
    tpu.vector_store %arg6[%c0_46, %c0_47, %c0_48], %52 {strides = array<i32>} : memref<1x32x4xbf16, #tpu.memory_space<vmem>>, vector<1x32x4xbf16>,
    return
  }
  func.func @transform_0(%arg0: i32, %arg1: i32) -> (i32, i32, i32, i32, i32) {
    %c0_i32 = arith.constant 0 : i32
    %c0_i32_0 = arith.constant 0 : i32
    %c0_i32_1 = arith.constant 0 : i32
    %c0_i32_2 = arith.constant 0 : i32
    %c0_i32_3 = arith.constant 0 : i32
    return %arg0, %c0_i32, %c0_i32_0, %c0_i32_1, %c0_i32_2 : i32, i32, i32, i32, i32
  }
  func.func @transform_1(%arg0: i32, %arg1: i32) -> (i32, i32) {
    %c0_i32 = arith.constant 0 : i32
    %c0_i32_0 = arith.constant 0 : i32
    %c0_i32_1 = arith.constant 0 : i32
    return %c0_i32, %c0_i32_0 : i32, i32
  }
  func.func @transform_2(%arg0: i32, %arg1: i32) -> (i32, i32) {
    %c0_i32 = arith.constant 0 : i32
    %c0_i32_0 = arith.constant 0 : i32
    %c0_i32_1 = arith.constant 0 : i32
    return %c0_i32, %c0_i32_0 : i32, i32
  }
  func.func @transform_3(%arg0: i32, %arg1: i32) -> (i32, i32) {
    %c0_i32 = arith.constant 0 : i32
    %c0_i32_0 = arith.constant 0 : i32
    %c0_i32_1 = arith.constant 0 : i32
    return %c0_i32, %c0_i32_0 : i32, i32
  }
  func.func @transform_4(%arg0: i32, %arg1: i32) -> (i32, i32, i32) {
    %c0_i32 = arith.constant 0 : i32
    %c0_i32_0 = arith.constant 0 : i32
    return %arg0, %arg1, %c0_i32 : i32, i32, i32
  }
}

module attributes {stable_mosaic.version = 11 : i64} {
  func.func @kernel(%arg0: i32, %arg1: memref<64x4xbf16, #tpu.memory_space<vmem>>, %arg2: memref<4x16xbf16, #tpu.memory_space<vmem>>, %arg3: memref<1x16xf32, #tpu.memory_space<vmem>>, %arg4: memref<1x16xf32, #tpu.memory_space<vmem>>, %arg5: memref<64x4xf32, #tpu.memory_space<vmem>>, %arg6: memref<4x16xbf16, #tpu.memory_space<vmem>>, %arg7: memref<1x16xf32, #tpu.memory_space<vmem>>, %arg8: memref<1x16xf32, #tpu.memory_space<vmem>>, %arg9: memref<64x16xf32, #tpu.memory_space<vmem>>) attributes {dimension_semantics = [#tpu.dimension_semantics<parallel>], iteration_bounds = array<i64: 2>, scalar_prefetch = 0 : i64, scratch_operands = 0 : i64, tpu.core_type = #tpu.core_type<tc>, window_params = [{transform_indices = @transform_0, window_bounds = array<i64: 64, 4>}, {pipeline_mode = #tpu.pipeline_mode<synchronous>, transform_indices = @transform_1, window_bounds = array<i64: 4, 16>}, {pipeline_mode = #tpu.pipeline_mode<synchronous>, transform_indices = @transform_2, window_bounds = array<i64: 1, 16>}, {pipeline_mode = #tpu.pipeline_mode<synchronous>, transform_indices = @transform_3, window_bounds = array<i64: 1, 16>}, {transform_indices = @transform_4, window_bounds = array<i64: 64, 4>}, {pipeline_mode = #tpu.pipeline_mode<synchronous>, transform_indices = @transform_5, window_bounds = array<i64: 4, 16>}, {pipeline_mode = #tpu.pipeline_mode<synchronous>, transform_indices = @transform_6, window_bounds = array<i64: 1, 16>}, {pipeline_mode = #tpu.pipeline_mode<synchronous>, transform_indices = @transform_7, window_bounds = array<i64: 1, 16>}, {transform_indices = @transform_8, window_bounds = array<i64: 64, 16>}]} {
    %c0 = arith.constant 0 : index
    %c0_0 = arith.constant 0 : index
    %0 = vector.load %arg1[%c0, %c0_0] : memref<64x4xbf16, #tpu.memory_space<vmem>>, vector<64x4xbf16>
    %c0_1 = arith.constant 0 : index
    %c0_2 = arith.constant 0 : index
    %1 = vector.load %arg2[%c0_1, %c0_2] : memref<4x16xbf16, #tpu.memory_space<vmem>>, vector<4x16xbf16>
    %cst = arith.constant dense<0.000000e+00> : vector<64x16xf32>
    %2 = tpu.matmul %0, %1, %cst {dimension_numbers = #tpu.dot_dimension_numbers<[1], [0], [0], [1], [0, 0, 1, 1], [], []>} : vector<64x4xbf16>, vector<4x16xbf16>, vector<64x16xf32> -> vector<64x16xf32>
    %c0_3 = arith.constant 0 : index
    %c0_4 = arith.constant 0 : index
    %3 = vector.load %arg3[%c0_3, %c0_4] : memref<1x16xf32, #tpu.memory_space<vmem>>, vector<1x16xf32>
    %4 = vector.broadcast %3 : vector<1x16xf32> to vector<64x16xf32>
    %5 = arith.mulf %2, %4 : vector<64x16xf32>
    %c0_5 = arith.constant 0 : index
    %c0_6 = arith.constant 0 : index
    %6 = vector.load %arg4[%c0_5, %c0_6] : memref<1x16xf32, #tpu.memory_space<vmem>>, vector<1x16xf32>
    %7 = vector.broadcast %6 : vector<1x16xf32> to vector<64x16xf32>
    %8 = arith.addf %5, %7 : vector<64x16xf32>
    %c0_7 = arith.constant 0 : index
    %c0_8 = arith.constant 0 : index
    %9 = vector.load %arg5[%c0_7, %c0_8] : memref<64x4xf32, #tpu.memory_space<vmem>>, vector<64x4xf32>
    %10 = arith.truncf %9 : vector<64x4xf32> to vector<64x4xbf16>
    %c0_9 = arith.constant 0 : index
    %c0_10 = arith.constant 0 : index
    %11 = vector.load %arg6[%c0_9, %c0_10] : memref<4x16xbf16, #tpu.memory_space<vmem>>, vector<4x16xbf16>
    %cst_11 = arith.constant dense<0.000000e+00> : vector<64x16xf32>
    %12 = tpu.matmul %10, %11, %cst_11 {dimension_numbers = #tpu.dot_dimension_numbers<[1], [0], [0], [1], [0, 0, 1, 1], [], []>} : vector<64x4xbf16>, vector<4x16xbf16>, vector<64x16xf32> -> vector<64x16xf32>
    %c0_12 = arith.constant 0 : index
    %c0_13 = arith.constant 0 : index
    %13 = vector.load %arg7[%c0_12, %c0_13] : memref<1x16xf32, #tpu.memory_space<vmem>>, vector<1x16xf32>
    %14 = vector.broadcast %13 : vector<1x16xf32> to vector<64x16xf32>
    %15 = arith.mulf %12, %14 : vector<64x16xf32>
    %c0_14 = arith.constant 0 : index
    %c0_15 = arith.constant 0 : index
    %16 = vector.load %arg8[%c0_14, %c0_15] : memref<1x16xf32, #tpu.memory_space<vmem>>, vector<1x16xf32>
    %17 = vector.broadcast %16 : vector<1x16xf32> to vector<64x16xf32>
    %18 = arith.addf %15, %17 : vector<64x16xf32>
    %19 = arith.addf %8, %18 : vector<64x16xf32>
    %cst_16 = arith.constant 0.000000e+00 : f32
    %20 = vector.broadcast %cst_16 : f32 to vector<64x16xf32>
    %21 = arith.maximumf %19, %20 : vector<64x16xf32>
    %c0_17 = arith.constant 0 : index
    %c0_18 = arith.constant 0 : index
    %22 = vector.load %arg9[%c0_17, %c0_18] : memref<64x16xf32, #tpu.memory_space<vmem>>, vector<64x16xf32>
    tpu.vector_store %arg9[%c0_17, %c0_18], %21 {strides = array<i32>} : memref<64x16xf32, #tpu.memory_space<vmem>>, vector<64x16xf32>,
    return
  }
  func.func @transform_0(%arg0: i32) -> (i32, i32) {
    %c0_i32 = arith.constant 0 : i32
    %c0_i32_0 = arith.constant 0 : i32
    return %arg0, %c0_i32 : i32, i32
  }
  func.func @transform_1(%arg0: i32) -> (i32, i32) {
    %c0_i32 = arith.constant 0 : i32
    %c0_i32_0 = arith.constant 0 : i32
    %c0_i32_1 = arith.constant 0 : i32
    return %c0_i32, %c0_i32_0 : i32, i32
  }
  func.func @transform_2(%arg0: i32) -> (i32, i32) {
    %c0_i32 = arith.constant 0 : i32
    %c0_i32_0 = arith.constant 0 : i32
    %c0_i32_1 = arith.constant 0 : i32
    return %c0_i32, %c0_i32_0 : i32, i32
  }
  func.func @transform_3(%arg0: i32) -> (i32, i32) {
    %c0_i32 = arith.constant 0 : i32
    %c0_i32_0 = arith.constant 0 : i32
    %c0_i32_1 = arith.constant 0 : i32
    return %c0_i32, %c0_i32_0 : i32, i32
  }
  func.func @transform_4(%arg0: i32) -> (i32, i32) {
    %c0_i32 = arith.constant 0 : i32
    %c0_i32_0 = arith.constant 0 : i32
    return %arg0, %c0_i32 : i32, i32
  }
  func.func @transform_5(%arg0: i32) -> (i32, i32) {
    %c0_i32 = arith.constant 0 : i32
    %c0_i32_0 = arith.constant 0 : i32
    %c0_i32_1 = arith.constant 0 : i32
    return %c0_i32, %c0_i32_0 : i32, i32
  }
  func.func @transform_6(%arg0: i32) -> (i32, i32) {
    %c0_i32 = arith.constant 0 : i32
    %c0_i32_0 = arith.constant 0 : i32
    %c0_i32_1 = arith.constant 0 : i32
    return %c0_i32, %c0_i32_0 : i32, i32
  }
  func.func @transform_7(%arg0: i32) -> (i32, i32) {
    %c0_i32 = arith.constant 0 : i32
    %c0_i32_0 = arith.constant 0 : i32
    %c0_i32_1 = arith.constant 0 : i32
    return %c0_i32, %c0_i32_0 : i32, i32
  }
  func.func @transform_8(%arg0: i32) -> (i32, i32) {
    %c0_i32 = arith.constant 0 : i32
    %c0_i32_0 = arith.constant 0 : i32
    return %arg0, %c0_i32 : i32, i32
  }
}

</mosaic_0001>

<bundles_post_ra>
// kernel: bottleneck_forward.3
= control target key start
LH: loop header
LB: loop body
LE: loop exit
PB: predicated region body
PF: predicated region fallthrough
CT: control target
= control target key end

     0   :  { %s981_s15 = smov 0   ;;  %s1195_s0 = inlined_call_operand.vmem [shape: f32[512,4], index: 0, kind: input, shape index: {}]   ;;  %s1196_s1 = inlined_call_operand.vmem [shape: bf16[4,4], index: 1, kind: input, shape index: {}]   ;;  %s1197_s2 = inlined_call_operand.vmem [shape: f32[1,4], index: 2, kind: input, shape index: {}]   ;;  %s1198_s3 = inlined_call_operand.vmem [shape: f32[1,4], index: 3, kind: input, shape index: {}]   ;;  %s1199_s4 = inlined_call_operand.vmem [shape: bf16[512,4], index: 4, kind: output, shape index: {}]  }
   0x1 LB: > { %s792_s16 = sadd.s32 4294967295, %s954_s15   ;;  %p796_p0 = scmp.ge.s32.totalorder %s954_s15, 1  ;;  %s954_s15 = sphi %s981_s15, %s14_s15  }
   0x2   : > { %p163_p1 = scmp.lt.s32.totalorder %s954_s15, 3 }
   0x4   : > { %p164_p2 = pnand %p796_p0, %p163_p1 }
   0x5   : > { %v250_v0 = vld [vmem:[%s1196_s1] sm:$0x3] (!%p164_p2)  ;;  %vm300_vm0 = vcmask (!%p164_p2), 1041408   ;;  %s797_s19 = sshll.u32 (!%p164_p2), %s792_s16, 5  ;;  %vm251_vm1 = vcmask (!%p164_p2), 31744   ;;  %vm703_vm2 = vcmask (!%p164_p2), 27648  }
   0x6   : > { %167 = sbr.rel (%p164_p2) target bundleno = 271 (0x10f), region = 36  ;;  %938 = vmatprep.subr.msk.bf16.mxu0 (!%p164_p2), %vm300_vm0, %v250_v0  ;;  %939 = vmatprep.subr.msk.bf16.mxu1 (!%p164_p2), %vm300_vm0, %v250_v0  ;;  %v302_v1 = vsel (!%p164_p2), %vm300_vm0, %v250_v0, 0  ;;  %p190_p3 = scmp.lt.s32.totalorder (!%p164_p2), %s797_s19, 63  ;;  %v1051_v50 = vld [vmem:[%s1197_s2] ss:$0 sm:$0xff] (!%p164_p2) }
   0x7   : > { %903 = vmatpush3.bf16.msra.mxu0 (!%p164_p2), %v302_v1  ;;  %937 = vmatpush3.bf16.msra.mxu1 (!%p164_p2), %v302_v1  ;;  %v1056_v52 = vld [vmem:[%s1198_s3] ss:$0 sm:$0xff] (!%p164_p2) }
   0xd   : > { %s1201_s19 = smov (!%p190_p3, %s797_s19), 63 }
   0xe   : > { %s798_s20 = sshll.u32 %s1201_s19, 3  ;;  %s800_s28 = sshll.u32 %s1201_s19, 2 }
   0xf   : > { %s998_s23 = scalar_lea.vmem %s1195_s0, %s798_s20  ;;  %s1075_s5 = scalar_lea.vmem %s1199_s4, %s800_s28 }
  0x10   : > { %v202_v2 = vld [vmem:[%s998_s23] sm:$0xff]  ;;  %v203_v3 = vld [vmem:[%s998_s23 + $0x8] sm:$0xff]  ;;  %v204_v7 = vld [vmem:[%s998_s23 + $0x10] sm:$0xff] }
  0x11   : > { %v218_v4 = vld [vmem:[%s998_s23 + $0x80] sm:$0xff]  ;;  %v234_v5 = vpack.c.bf16 %v203_v3, %v202_v2  ;;  %v219_v6 = vld [vmem:[%s998_s23 + $0x88] sm:$0xff]  ;;  %v205_v8 = vld [vmem:[%s998_s23 + $0x18] sm:$0xff] }
  0x12   : > { %v242_v9 = vpack.c.bf16 %v219_v6, %v218_v4  ;;  %v235_v10 = vpack.c.bf16 %v205_v8, %v204_v7  ;;  %v220_v11 = vld [vmem:[%s998_s23 + $0x90] sm:$0xff]  ;;  %v221_v12 = vld [vmem:[%s998_s23 + $0x98] sm:$0xff]  ;;  %v206_v13 = vld [vmem:[%s998_s23 + $0x20] sm:$0xff] }
  0x13   : > { %904 = vmatprep.mubr.msk.bf16.mxu0 %vm251_vm1, %v234_v5  ;;  %v243_v14 = vpack.c.bf16 %v221_v12, %v220_v11  ;;  %v207_v15 = vld [vmem:[%s998_s23 + $0x28] sm:$0xff]  ;;  %v222_v16 = vld [vmem:[%s998_s23 + $0xa0] sm:$0xff]  ;;  %v208_v20 = vld [vmem:[%s998_s23 + $0x30] sm:$0xff] }
  0x14   : > { %v223_v17 = vld [vmem:[%s998_s23 + $0xa8] sm:$0xff]  ;;  %920 = vmatprep.mubr.msk.bf16.mxu1 %vm251_vm1, %v242_v9  ;;  %905 = vmatmul.mubr.msk.bf16.vlgmr.msra.gmra.mrb[0].mxu0 %vm251_vm1, %v235_v10  ;;  %v236_v18 = vpack.c.bf16 %v207_v15, %v206_v13  ;;  %v209_v21 = vld [vmem:[%s998_s23 + $0x38] sm:$0xff]  ;;  %v224_v22 = vld [vmem:[%s998_s23 + $0xb0] sm:$0xff] }
  0x15   : > { %v244_v19 = vpack.c.bf16 %v223_v17, %v222_v16  ;;  %921 = vmatmul.mubr.msk.bf16.vlgmr.msra.gmra.mrb[0].mxu1 %vm251_vm1, %v243_v14  ;;  %v225_v23 = vld [vmem:[%s998_s23 + $0xb8] sm:$0xff]  ;;  %v210_v24 = vld [vmem:[%s998_s23 + $0x40] sm:$0xff]  ;;  %v211_v25 = vld [vmem:[%s998_s23 + $0x48] sm:$0xff]  ;;  %v237_v28 = vpack.c.bf16 %v209_v21, %v208_v20 }
  0x16   : > { %908 = vmatprep.mubr.msk.bf16.mxu0 %vm251_vm1, %v236_v18  ;;  %v226_v26 = vld [vmem:[%s998_s23 + $0xc0] sm:$0xff]  ;;  %v227_v27 = vld [vmem:[%s998_s23 + $0xc8] sm:$0xff]  ;;  %v245_v29 = vpack.c.bf16 %v225_v23, %v224_v22  ;;  %v238_v30 = vpack.c.bf16 %v211_v25, %v210_v24  ;;  %v212_v32 = vld [vmem:[%s998_s23 + $0x50] sm:$0xff] }
  0x17   : > { %924 = vmatprep.mubr.msk.bf16.mxu1 %vm251_vm1, %v244_v19  ;;  %v246_v31 = vpack.c.bf16 %v227_v27, %v226_v26  ;;  %v213_v33 = vld [vmem:[%s998_s23 + $0x58] sm:$0xff]  ;;  %v228_v34 = vld [vmem:[%s998_s23 + $0xd0] sm:$0xff]  ;;  %v214_v36 = vld [vmem:[%s998_s23 + $0x60] sm:$0xff] }
  0x18   : > { %v229_v35 = vld [vmem:[%s998_s23 + $0xd8] sm:$0xff]  ;;  %v215_v37 = vld [vmem:[%s998_s23 + $0x68] sm:$0xff]  ;;  %v230_v38 = vld [vmem:[%s998_s23 + $0xe0] sm:$0xff]  ;;  %v239_v40 = vpack.c.bf16 %v213_v33, %v212_v32 }
  0x19   : > { %v231_v39 = vld [vmem:[%s998_s23 + $0xe8] sm:$0xff]  ;;  %v247_v41 = vpack.c.bf16 %v229_v35, %v228_v34  ;;  %v240_v42 = vpack.c.bf16 %v215_v37, %v214_v36  ;;  %v216_v44 = vld [vmem:[%s998_s23 + $0x70] sm:$0xff]  ;;  %v217_v45 = vld [vmem:[%s998_s23 + $0x78] sm:$0xff] }
  0x1a   : > { %v248_v43 = vpack.c.bf16 %v231_v39, %v230_v38  ;;  %v232_v46 = vld [vmem:[%s998_s23 + $0xf0] sm:$0xff]  ;;  %v233_v47 = vld [vmem:[%s998_s23 + $0xf8] sm:$0xff]  ;;  %v241_v48 = vpack.c.bf16 %v217_v45, %v216_v44 }
  0x1b   : > { %v249_v49 = vpack.c.bf16 %v233_v47, %v232_v46 }
  0x1c   : > { %909 = vmatmul.mubr.msk.bf16.gmra.mrb[4].mxu0 %vm251_vm1, %v237_v28 }
  0x1d   : > { %925 = vmatmul.mubr.msk.bf16.gmra.mrb[4].mxu1 %vm251_vm1, %v245_v29  ;;  %912 = vmatprep.mubr.msk.bf16.mxu0 %vm251_vm1, %v238_v30 }
  0x1e   : > { %928 = vmatprep.mubr.msk.bf16.mxu1 %vm251_vm1, %v246_v31 }
  0x24   : > { %913 = vmatmul.mubr.msk.bf16.gmra.mrb[8].mxu0 %vm251_vm1, %v239_v40 }
  0x25   : > { %929 = vmatmul.mubr.msk.bf16.gmra.mrb[8].mxu1 %vm251_vm1, %v247_v41  ;;  %916 = vmatprep.mubr.msk.bf16.mxu0 %vm251_vm1, %v240_v42 }
  0x26   : > { %932 = vmatprep.mubr.msk.bf16.mxu1 %vm251_vm1, %v248_v43 }
  0x2c   : > { %917 = vmatmul.mubr.msk.bf16.gmra.mrb[12].mxu0 %vm251_vm1, %v241_v48 }
  0x2d   : > { %933 = vmatmul.mubr.msk.bf16.gmra.mrb[12].mxu1 %vm251_vm1, %v249_v49 }
  0xe7   : > { %v906_v51 = vpop.f32.mrb[0].mxu0 }
  0xe8   : > { %v474_v53 = vmul.f32 %v906_v51, %v1051_v50  ;;  %v922_v54 = vpop.f32.mrb[0].mxu1  ;;  %v338_v55 = vpop.f32.mrb[1].mxu0 }
  0xe9   : > { %v490_v56 = vmul.f32 %v922_v54, %v1051_v50  ;;  %v472_v57 = vmul.f32 %v1051_v50, %v338_v55  ;;  %v402_v58 = vpop.f32.mrb[1].mxu1  ;;  %v907_v59 = vpop.f32.mrb[2].mxu0 }
  0xea   : > { %v513_v60 = vadd.f32 %v1056_v52, %v474_v53  ;;  %v488_v61 = vmul.f32 %v1051_v50, %v402_v58  ;;  %v475_v62 = vmul.f32 %v907_v59, %v1051_v50  ;;  %v923_v63 = vpop.f32.mrb[2].mxu1  ;;  %v341_v0 = vpop.f32.mrb[3].mxu0 }
  0xeb   : > { %v529_v1 = vadd.f32 %v1056_v52, %v490_v56  ;;  %v511_v2 = vadd.f32 %v1056_v52, %v472_v57  ;;  %v491_v3 = vmul.f32 %v923_v63, %v1051_v50  ;;  %v473_v4 = vmul.f32 %v1051_v50, %v341_v0  ;;  %v405_v5 = vpop.f32.mrb[3].mxu1 }
  0xec   : > { %v545_v6 = vmax.f32 %v513_v60, 0.0  ;;  %v527_v7 = vadd.f32 %v1056_v52, %v488_v61  ;;  %v514_v8 = vadd.f32 %v1056_v52, %v475_v62  ;;  %v489_v9 = vmul.f32 %v1051_v50, %v405_v5 }
  0xed   : > { %v561_v10 = vmax.f32 %v529_v1, 0.0  ;;  %v543_v11 = vmax.f32 %v511_v2, 0.0  ;;  %v530_v12 = vadd.f32 %v1056_v52, %v491_v3  ;;  %v512_v13 = vadd.f32 %v1056_v52, %v473_v4 }
  0xee   : > { %v855_v14 = vpack.c.bf16 %v545_v6, %v545_v6  ;;  %v559_v15 = vmax.f32 %v527_v7, 0.0  ;;  %v546_v16 = vmax.f32 %v514_v8, 0.0  ;;  %v528_v17 = vadd.f32 %v1056_v52, %v489_v9 }
  0xef   : > { %v871_v18 = vpack.c.bf16 %v561_v10, %v561_v10  ;;  %v853_v19 = vpack.c.bf16 %v543_v11, %v543_v11  ;;  %v562_v20 = vmax.f32 %v530_v12, 0.0  ;;  %v544_v21 = vmax.f32 %v512_v13, 0.0  ;;  %v910_v22 = vpop.f32.mrb[4].mxu0 }
  0xf0   : > { %706 = vst.msk [vmem:[%s1075_s5 + $0x8] sm:$0xf] %vm703_vm2, %v855_v14  ;;  %v869_v23 = vpack.c.bf16 %v559_v15, %v559_v15  ;;  %v856_v24 = vpack.c.bf16 %v546_v16, %v546_v16  ;;  %v560_v25 = vmax.f32 %v528_v17, 0.0  ;;  %v478_v26 = vmul.f32 %v910_v22, %v1051_v50  ;;  %v926_v27 = vpop.f32.mrb[4].mxu1  ;;  %v354_v28 = vpop.f32.mrb[5].mxu0 }
  0xf1   : > { %722 = vst.msk [vmem:[%s1075_s5 + $0x48] sm:$0xf] %vm703_vm2, %v871_v18  ;;  %704 = vst.msk [vmem:[%s1075_s5] sm:$0xf] %vm703_vm2, %v853_v19  ;;  %v872_v29 = vpack.c.bf16 %v562_v20, %v562_v20  ;;  %v854_v30 = vpack.c.bf16 %v544_v21, %v544_v21  ;;  %v494_v31 = vmul.f32 %v926_v27, %v1051_v50  ;;  %v418_v33 = vpop.f32.mrb[5].mxu1  ;;  %v911_v34 = vpop.f32.mrb[6].mxu0 }
  0xf2   : > { %v476_v32 = vmul.f32 %v1051_v50, %v354_v28  ;;  %720 = vst.msk [vmem:[%s1075_s5 + $0x40] sm:$0xf] %vm703_vm2, %v869_v23  ;;  %707 = vst.msk [vmem:[%s1075_s5 + $0xc] sm:$0xf] %vm703_vm2, %v856_v24  ;;  %v870_v35 = vpack.c.bf16 %v560_v25, %v560_v25  ;;  %v517_v36 = vadd.f32 %v1056_v52, %v478_v26  ;;  %v927_v39 = vpop.f32.mrb[6].mxu1  ;;  %v357_v40 = vpop.f32.mrb[7].mxu0 }
  0xf3   : > { %v492_v37 = vmul.f32 %v1051_v50, %v418_v33  ;;  %v479_v38 = vmul.f32 %v911_v34, %v1051_v50  ;;  %723 = vst.msk [vmem:[%s1075_s5 + $0x4c] sm:$0xf] %vm703_vm2, %v872_v29  ;;  %705 = vst.msk [vmem:[%s1075_s5 + $0x4] sm:$0xf] %vm703_vm2, %v854_v30  ;;  %v533_v41 = vadd.f32 %v1056_v52, %v494_v31  ;;  %v421_v45 = vpop.f32.mrb[7].mxu1 }
  0xf4   : > { %v515_v42 = vadd.f32 %v1056_v52, %v476_v32  ;;  %v495_v43 = vmul.f32 %v927_v39, %v1051_v50  ;;  %v477_v44 = vmul.f32 %v1051_v50, %v357_v40  ;;  %721 = vst.msk [vmem:[%s1075_s5 + $0x44] sm:$0xf] %vm703_vm2, %v870_v35  ;;  %v549_v46 = vmax.f32 %v517_v36, 0.0 }
  0xf5   : > { %v531_v47 = vadd.f32 %v1056_v52, %v492_v37  ;;  %v518_v48 = vadd.f32 %v1056_v52, %v479_v38  ;;  %v493_v49 = vmul.f32 %v1051_v50, %v421_v45  ;;  %v565_v51 = vmax.f32 %v533_v41, 0.0 }
  0xf6   : > { %v547_v53 = vmax.f32 %v515_v42, 0.0  ;;  %v534_v54 = vadd.f32 %v1056_v52, %v495_v43  ;;  %v516_v55 = vadd.f32 %v1056_v52, %v477_v44  ;;  %v859_v56 = vpack.c.bf16 %v549_v46, %v549_v46 }
  0xf7   : > { %v563_v57 = vmax.f32 %v531_v47, 0.0  ;;  %v550_v58 = vmax.f32 %v518_v48, 0.0  ;;  %v532_v59 = vadd.f32 %v1056_v52, %v493_v49  ;;  %v875_v60 = vpack.c.bf16 %v565_v51, %v565_v51  ;;  %v914_v0 = vpop.f32.mrb[8].mxu0 }
  0xf8   : > { %v857_v61 = vpack.c.bf16 %v547_v53, %v547_v53  ;;  %v566_v62 = vmax.f32 %v534_v54, 0.0  ;;  %v548_v63 = vmax.f32 %v516_v55, 0.0  ;;  %710 = vst.msk [vmem:[%s1075_s5 + $0x18] sm:$0xf] %vm703_vm2, %v859_v56  ;;  %v482_v4 = vmul.f32 %v914_v0, %v1051_v50  ;;  %v930_v5 = vpop.f32.mrb[8].mxu1  ;;  %v370_v6 = vpop.f32.mrb[9].mxu0 }
  0xf9   : > { %v873_v1 = vpack.c.bf16 %v563_v57, %v563_v57  ;;  %v860_v2 = vpack.c.bf16 %v550_v58, %v550_v58  ;;  %v564_v3 = vmax.f32 %v532_v59, 0.0  ;;  %726 = vst.msk [vmem:[%s1075_s5 + $0x58] sm:$0xf] %vm703_vm2, %v875_v60  ;;  %v498_v9 = vmul.f32 %v930_v5, %v1051_v50  ;;  %v434_v11 = vpop.f32.mrb[9].mxu1  ;;  %v915_v12 = vpop.f32.mrb[10].mxu0 }
  0xfa   : > { %708 = vst.msk [vmem:[%s1075_s5 + $0x10] sm:$0xf] %vm703_vm2, %v857_v61  ;;  %v876_v7 = vpack.c.bf16 %v566_v62, %v566_v62  ;;  %v858_v8 = vpack.c.bf16 %v548_v63, %v548_v63  ;;  %v480_v10 = vmul.f32 %v1051_v50, %v370_v6  ;;  %v521_v14 = vadd.f32 %v1056_v52, %v482_v4  ;;  %v931_v17 = vpop.f32.mrb[10].mxu1  ;;  %v373_v18 = vpop.f32.mrb[11].mxu0 }
  0xfb   : > { %724 = vst.msk [vmem:[%s1075_s5 + $0x50] sm:$0xf] %vm703_vm2, %v873_v1  ;;  %711 = vst.msk [vmem:[%s1075_s5 + $0x1c] sm:$0xf] %vm703_vm2, %v860_v2  ;;  %v874_v13 = vpack.c.bf16 %v564_v3, %v564_v3  ;;  %v496_v15 = vmul.f32 %v1051_v50, %v434_v11  ;;  %v483_v16 = vmul.f32 %v915_v12, %v1051_v50  ;;  %v437_v23 = vpop.f32.mrb[11].mxu1 }
  0xfc   : > { %727 = vst.msk [vmem:[%s1075_s5 + $0x5c] sm:$0xf] %vm703_vm2, %v876_v7  ;;  %709 = vst.msk [vmem:[%s1075_s5 + $0x14] sm:$0xf] %vm703_vm2, %v858_v8  ;;  %v537_v19 = vadd.f32 %v1056_v52, %v498_v9  ;;  %v519_v20 = vadd.f32 %v1056_v52, %v480_v10  ;;  %v499_v21 = vmul.f32 %v931_v17, %v1051_v50  ;;  %v553_v24 = vmax.f32 %v521_v14, 0.0 }
  0xfd   : > { %v481_v22 = vmul.f32 %v1051_v50, %v373_v18  ;;  %725 = vst.msk [vmem:[%s1075_s5 + $0x54] sm:$0xf] %vm703_vm2, %v874_v13  ;;  %v535_v25 = vadd.f32 %v1056_v52, %v496_v15  ;;  %v522_v26 = vadd.f32 %v1056_v52, %v483_v16  ;;  %v497_v27 = vmul.f32 %v1051_v50, %v437_v23 }
  0xfe   : > { %v569_v28 = vmax.f32 %v537_v19, 0.0  ;;  %v551_v29 = vmax.f32 %v519_v20, 0.0  ;;  %v538_v30 = vadd.f32 %v1056_v52, %v499_v21  ;;  %v863_v32 = vpack.c.bf16 %v553_v24, %v553_v24 }
  0xff   : > { %v520_v31 = vadd.f32 %v1056_v52, %v481_v22  ;;  %v567_v33 = vmax.f32 %v535_v25, 0.0  ;;  %v554_v34 = vmax.f32 %v522_v26, 0.0  ;;  %v536_v35 = vadd.f32 %v1056_v52, %v497_v27  ;;  %v918_v40 = vpop.f32.mrb[12].mxu0 }
 0x100   : > { %v879_v36 = vpack.c.bf16 %v569_v28, %v569_v28  ;;  %v861_v37 = vpack.c.bf16 %v551_v29, %v551_v29  ;;  %v570_v38 = vmax.f32 %v538_v30, 0.0  ;;  %714 = vst.msk [vmem:[%s1075_s5 + $0x28] sm:$0xf] %vm703_vm2, %v863_v32  ;;  %v486_v44 = vmul.f32 %v918_v40, %v1051_v50  ;;  %v934_v45 = vpop.f32.mrb[12].mxu1  ;;  %v386_v46 = vpop.f32.mrb[13].mxu0 }
 0x101   : > { %v552_v39 = vmax.f32 %v520_v31, 0.0  ;;  %v877_v41 = vpack.c.bf16 %v567_v33, %v567_v33  ;;  %v864_v42 = vpack.c.bf16 %v554_v34, %v554_v34  ;;  %v568_v43 = vmax.f32 %v536_v35, 0.0  ;;  %v450_v53 = vpop.f32.mrb[13].mxu1  ;;  %v919_v54 = vpop.f32.mrb[14].mxu0 }
 0x102   : > { %730 = vst.msk [vmem:[%s1075_s5 + $0x68] sm:$0xf] %vm703_vm2, %v879_v36  ;;  %712 = vst.msk [vmem:[%s1075_s5 + $0x20] sm:$0xf] %vm703_vm2, %v861_v37  ;;  %v880_v47 = vpack.c.bf16 %v570_v38, %v570_v38  ;;  %v502_v49 = vmul.f32 %v934_v45, %v1051_v50  ;;  %v484_v51 = vmul.f32 %v1051_v50, %v386_v46  ;;  %v935_v59 = vpop.f32.mrb[14].mxu1  ;;  %v389_v60 = vpop.f32.mrb[15].mxu0 }
 0x103   : > { %v862_v48 = vpack.c.bf16 %v552_v39, %v552_v39  ;;  %728 = vst.msk [vmem:[%s1075_s5 + $0x60] sm:$0xf] %vm703_vm2, %v877_v41  ;;  %715 = vst.msk [vmem:[%s1075_s5 + $0x2c] sm:$0xf] %vm703_vm2, %v864_v42  ;;  %v878_v55 = vpack.c.bf16 %v568_v43, %v568_v43  ;;  %v525_v56 = vadd.f32 %v1056_v52, %v486_v44  ;;  %v453_v1 = vpop.f32.mrb[15].mxu1 }
 0x104   : > { %v500_v57 = vmul.f32 %v1051_v50, %v450_v53  ;;  %v487_v58 = vmul.f32 %v919_v54, %v1051_v50  ;;  %731 = vst.msk [vmem:[%s1075_s5 + $0x6c] sm:$0xf] %vm703_vm2, %v880_v47  ;;  %v541_v61 = vadd.f32 %v1056_v52, %v502_v49  ;;  %v523_v62 = vadd.f32 %v1056_v52, %v484_v51 }
 0x105   : > { %713 = vst.msk [vmem:[%s1075_s5 + $0x24] sm:$0xf] %vm703_vm2, %v862_v48  ;;  %v503_v63 = vmul.f32 %v935_v59, %v1051_v50  ;;  %v485_v0 = vmul.f32 %v1051_v50, %v389_v60  ;;  %729 = vst.msk [vmem:[%s1075_s5 + $0x64] sm:$0xf] %vm703_vm2, %v878_v55  ;;  %v557_v2 = vmax.f32 %v525_v56, 0.0  ;;  %v501_v5 = vmul.f32 %v1051_v50, %v453_v1 }
 0x106   : > { %v539_v3 = vadd.f32 %v1056_v52, %v500_v57  ;;  %v526_v4 = vadd.f32 %v1056_v52, %v487_v58  ;;  %v573_v6 = vmax.f32 %v541_v61, 0.0  ;;  %v555_v7 = vmax.f32 %v523_v62, 0.0 }
 0x107   : > { %v542_v8 = vadd.f32 %v1056_v52, %v503_v63  ;;  %v524_v9 = vadd.f32 %v1056_v52, %v485_v0  ;;  %v867_v10 = vpack.c.bf16 %v557_v2, %v557_v2  ;;  %v540_v13 = vadd.f32 %v1056_v52, %v501_v5 }
 0x108   : > { %v571_v11 = vmax.f32 %v539_v3, 0.0  ;;  %v558_v12 = vmax.f32 %v526_v4, 0.0  ;;  %v883_v14 = vpack.c.bf16 %v573_v6, %v573_v6  ;;  %v865_v15 = vpack.c.bf16 %v555_v7, %v555_v7 }
 0x109   : > { %v574_v50 = vmax.f32 %v542_v8, 0.0  ;;  %v556_v16 = vmax.f32 %v524_v9, 0.0  ;;  %718 = vst.msk [vmem:[%s1075_s5 + $0x38] sm:$0xf] %vm703_vm2, %v867_v10  ;;  %v572_v19 = vmax.f32 %v540_v13, 0.0 }
 0x10a   : > { %v881_v17 = vpack.c.bf16 %v571_v11, %v571_v11  ;;  %v868_v18 = vpack.c.bf16 %v558_v12, %v558_v12  ;;  %734 = vst.msk [vmem:[%s1075_s5 + $0x78] sm:$0xf] %vm703_vm2, %v883_v14  ;;  %716 = vst.msk [vmem:[%s1075_s5 + $0x30] sm:$0xf] %vm703_vm2, %v865_v15 }
 0x10b   : > { %v884_v20 = vpack.c.bf16 %v574_v50, %v574_v50  ;;  %v866_v21 = vpack.c.bf16 %v556_v16, %v556_v16  ;;  %v882_v52 = vpack.c.bf16 %v572_v19, %v572_v19 }
 0x10c   : > { %732 = vst.msk [vmem:[%s1075_s5 + $0x70] sm:$0xf] %vm703_vm2, %v881_v17  ;;  %719 = vst.msk [vmem:[%s1075_s5 + $0x3c] sm:$0xf] %vm703_vm2, %v868_v18 }
 0x10d   : > { %735 = vst.msk [vmem:[%s1075_s5 + $0x7c] sm:$0xf] %vm703_vm2, %v884_v20  ;;  %717 = vst.msk [vmem:[%s1075_s5 + $0x34] sm:$0xf] %vm703_vm2, %v866_v21 }
 0x10e   : > { %733 = vst.msk [vmem:[%s1075_s5 + $0x74] sm:$0xf] %vm703_vm2, %v882_v52 }
 0x10f PF: > { %s14_s15 = sadd.s32 1, %s954_s15  }
 0x110   : > { %p11_p4 = scmp.ge.s32.totalorder %s14_s15, 4  }
 0x112   :  { %13 = sbr.rel (!%p11_p4) target bundleno = 1 (0x1), region = 66 }

// kernel: bottleneck_forward.5
= control target key start
LH: loop header
LB: loop body
LE: loop exit
PB: predicated region body
PF: predicated region fallthrough
CT: control target
= control target key end

     0   :  { %13 = vsyncpa [#allocation3], 0  ;;  %s1081_s0 = inlined_call_operand.vmem [shape: bf16[128,4], index: 0, kind: input, shape index: {}]   ;;  %s1082_s1 = inlined_call_operand.vmem [shape: bf16[4,16], index: 1, kind: input, shape index: {}]   ;;  %s1083_s2 = inlined_call_operand.vmem [shape: f32[1,16], index: 2, kind: input, shape index: {}]   ;;  %s1084_s3 = inlined_call_operand.vmem [shape: f32[1,16], index: 3, kind: input, shape index: {}]   ;;  %s1085_s4 = inlined_call_operand.vmem [shape: f32[128,4], index: 4, kind: input, shape index: {}]   ;;  %s1086_s5 = inlined_call_operand.vmem [shape: bf16[4,16], index: 5, kind: input, shape index: {}]   ;;  %s1087_s6 = inlined_call_operand.vmem [shape: f32[1,16], index: 6, kind: input, shape index: {}]   ;;  %s1088_s7 = inlined_call_operand.vmem [shape: f32[1,16], index: 7, kind: input, shape index: {}]   ;;  %s1089_s8 = inlined_call_operand.hbm [shape: f32[128,16], index: 8, kind: output, shape index: {}]  }
   0x1   :  { %15 = vsyncpa [#allocation3 + $0x1], 0  ;;  %s927_s27 = smov 0   ;;  %s929_s28 = smov 0  }
   0x2   :  { %s931_s29 = smov 0   ;;  %s933_s30 = smov 0  }
   0x3 LB: > { %s948_s9 = sadd.s32 4294967295, %s877_s30   ;;  %s707_s10 = sadd.s32 4294967294, %s877_s30   ;;  %s877_s30 = sphi %s933_s30, %s1095_s30   ;;  %s873_s29 = sphi %s931_s29, %s1094_s29   ;;  %s869_s28 = sphi %s929_s28, %s1093_s28   ;;  %s865_s27 = sphi %s927_s27, %s1092_s27  }
   0x4   : > { %s952_s11 = sadd.s32 1, %s877_s30   ;;  %s206_s12 = sadd.s32 1, %s873_s29 }
   0x5   : > { %s203_s13 = ssub.s32 %s877_s30, %s952_s11  ;;  %p216_p0 = scmp.ne.s32.totalorder %s873_s29, %s869_s28 }
   0x6   : > { %p204_p1 = scmp.eq.s32.totalorder %s203_s13, 0  ;;  %p217_p2 = scmp.eq.s32.totalorder %s948_s9, 1 }
   0x7   : > { %p222_p3 = scmp.ne.s32.totalorder %s869_s28, %s865_s27  ;;  %p223_p4 = scmp.eq.s32.totalorder %s707_s10, 1 }
   0x8   : > { %s963_s14 = scalar_select %p204_p1, %s873_s29, %s206_s12  }
   0x9   : > { %p965_p5 = por %p217_p2, %p216_p0  ;;  %p969_p6 = por %p223_p4, %p222_p3 }
   0xa   : > { %p710_p7 = scmp.ge.s32.totalorder %s877_s30, 1  ;;  %p277_p8 = scmp.lt.s32.totalorder %s877_s30, 3 }
   0xc   : > { %p278_p9 = pnand %p710_p7, %p277_p8 }
   0xd   : > { %v338_v0 = vld [vmem:[%s1082_s1] sm:$0x3] (!%p278_p9)  ;;  %vm372_vm0 = vcmask (!%p278_p9), 1041408   ;;  %s712_s21 = sshll.u32 (!%p278_p9), %s948_s9, 3  ;;  %vm359_vm1 = vcmask (!%p278_p9), 31744   ;;  %vm610_vm2 = vcmask (!%p278_p9), 130048  }
   0xe   : > { %281 = sbr.rel (%p278_p9) target bundleno = 275 (0x113), region = 52  ;;  %v483_v1 = vld [vmem:[%s1086_s5] sm:$0x3] (!%p278_p9)  ;;  %768 = vmatprep.subr.msk.bf16.mxu0 (!%p278_p9), %vm372_vm0, %v338_v0  ;;  %v374_v2 = vsel (!%p278_p9), %vm372_vm0, %v338_v0, 0  ;;  %p317_p10 = scmp.lt.s32.totalorder (!%p278_p9), %s712_s21, 15 }
   0xf   : > { %769 = vmatprep.subr.msk.bf16.mxu1 (!%p278_p9), %vm372_vm0, %v483_v1  ;;  %v497_v3 = vsel (!%p278_p9), %vm372_vm0, %v483_v1, 0  ;;  %749 = vmatpush3.bf16.msra.mxu0 (!%p278_p9), %v374_v2  ;;  %v724_v20 = vld [vmem:[%s1083_s2] ss:$0 sm:$0xff] (!%p278_p9)  ;;  %s737_s12 = sshll.u32 (!%p278_p9), %s948_s9, 10 }
  0x10   : > { %759 = vmatpush3.bf16.msra.mxu1 (!%p278_p9), %v497_v3  ;;  %v725_v22 = vld [vmem:[%s1084_s3] ss:$0 sm:$0xff] (!%p278_p9)  ;;  %s1028_s19 = scalar_lea.hbm (!%p278_p9), %s1089_s8, %s737_s12 }
  0x11   : > { %v730_v23 = vld [vmem:[%s1087_s6] ss:$0 sm:$0xff] (!%p278_p9) }
  0x12   : > { %v731_v27 = vld [vmem:[%s1088_s7] ss:$0 sm:$0xff] (!%p278_p9) }
  0x15   : > { %s1097_s21 = smov (!%p317_p10, %s712_s21), 15 }
  0x16   : > { %s713_s22 = sshll.u32 %s1097_s21, 2  ;;  %s715_s23 = sshll.u32 %s1097_s21, 3 }
  0x17   : > { %s320_s26 = scalar_lea.vmem %s1081_s0, %s713_s22  ;;  %s326_s13 = scalar_lea.vmem %s1085_s4, %s715_s23 }
  0x18   : > { %v811_v4 = vld [vmem:[%s320_s26] sm:$0xff]   ;;  %v472_v6 = vld [vmem:[%s326_s13 + $0x8] sm:$0xff]  ;;  %v473_v9 = vld [vmem:[%s326_s13 + $0x10] sm:$0xff]  ;;  %s313_s23 = sand.u32 1, %s869_s28   ;;  %s879_s21 = smov [#allocation2]  }
  0x19   : > { %v471_v5 = vld [vmem:[%s326_s13] sm:$0xff]  ;;  %750 = vmatprep.mubr.msk.bf16.mxu0 %vm359_vm1, %v811_v4  ;;  %v812_v8 = vld [vmem:[%s320_s26 + $0x8] sm:$0xff]   ;;  %v474_v10 = vld [vmem:[%s326_s13 + $0x18] sm:$0xff]  ;;  %s1040_s9 = scalar_lea.sflag [#allocation3], %s313_s23  ;;  %s819_s22 = sshll.u32 %s879_s21, 4  ;;  %s820_s22 = int_to_ptr.vmem [resolvable:$false] %s819_s22 }
  0x1a   : > { %v479_v7 = vpack.c.bf16 %v472_v6, %v471_v5  ;;  %751 = vmatmul.mubr.msk.bf16.vlgmr.msra.gmra.mrb[0].mxu0 %vm359_vm1, %v812_v8  ;;  %v480_v11 = vpack.c.bf16 %v474_v10, %v473_v9  ;;  %v813_v12 = vld [vmem:[%s320_s26 + $0x10] sm:$0xff]   ;;  %v475_v13 = vld [vmem:[%s326_s13 + $0x20] sm:$0xff]  ;;  %v476_v14 = vld [vmem:[%s326_s13 + $0x28] sm:$0xff]  ;;  %s821_s24 = scalar_lea.vmem %s820_s22, 2048 }
  0x1b   : > { %v481_v15 = vpack.c.bf16 %v476_v14, %v475_v13  ;;  %754 = vmatprep.mubr.msk.bf16.mxu0 %vm359_vm1, %v813_v12  ;;  %v477_v16 = vld [vmem:[%s326_s13 + $0x30] sm:$0xff]  ;;  %v478_v17 = vld [vmem:[%s326_s13 + $0x38] sm:$0xff] }
  0x1c   : > { %760 = vmatprep.mubr.msk.bf16.mxu1 %vm359_vm1, %v479_v7  ;;  %v814_v18 = vld [vmem:[%s320_s26 + $0x18] sm:$0xff]   ;;  %v482_v19 = vpack.c.bf16 %v478_v17, %v477_v16  ;;  %s711_s26 = sshll.u32 %s313_s23, 6 }
  0x1d   : > { %761 = vmatmul.mubr.msk.bf16.vlgmr.msra.gmra.mrb[0].mxu1 %vm359_vm1, %v480_v11  ;;  %s1011_s10 = scalar_lea.vmem [#allocation2], %s711_s26 }
  0x1e   : > { %764 = vmatprep.mubr.msk.bf16.mxu1 %vm359_vm1, %v481_v15  ;;  %s633_s13 = sshll.u32 %s1011_s10, 4  ;;  %s1030_s13 = int_to_ptr.vmem [resolvable:$true] %s633_s13 }
  0x1f   : > { %s815_s20 = scalar_lea.vmem %s1030_s13, 1024  ;;  %p822_p0 = scmp.lt.s32.totalorder %s1030_s13, %s820_s22 }
  0x20   : > { %p816_p11 = scmp.ne.s32.totalorder %s1030_s13, %s815_s20  ;;  %p823_p1 = scmp.lt.s32.totalorder %s821_s24, %s815_s20 }
  0x22   : > { %755 = vmatmul.mubr.msk.bf16.gmra.mrb[4].mxu0 %vm359_vm1, %v814_v18  ;;  %p817_p12 = pnand %p816_p11, %p965_p5  ;;  %p824_p2 = por %p823_p1, %p822_p0 }
  0x24   : > { %p818_p13 = pneg %p817_p12 }
  0x25   : > { %765 = vmatmul.mubr.msk.bf16.gmra.mrb[4].mxu1 %vm359_vm1, %v482_v19 }
  0x26   : > { %p825_p3 = pnand %p824_p2, %p818_p13 }
  0xed   : > { %v752_v21 = vpop.f32.mrb[0].mxu0 }
  0xee   : > { %v450_v24 = vmul.f32 %v752_v21, %v724_v20  ;;  %v410_v25 = vpop.f32.mrb[1].mxu0 }
  0xef   : > { %v448_v28 = vmul.f32 %v724_v20, %v410_v25  ;;  %v753_v29 = vpop.f32.mrb[2].mxu0 }
  0xf0   : > { %v762_v26 = vpop.f32.mrb[0].mxu1  ;;  %v465_v30 = vadd.f32 %v725_v22, %v450_v24  ;;  %v451_v33 = vmul.f32 %v753_v29, %v724_v20  ;;  %v413_v34 = vpop.f32.mrb[3].mxu0 }
  0xf1   : > { %v573_v31 = vmul.f32 %v762_v26, %v730_v23  ;;  %v533_v32 = vpop.f32.mrb[1].mxu1  ;;  %v463_v35 = vadd.f32 %v725_v22, %v448_v28  ;;  %v449_v38 = vmul.f32 %v724_v20, %v413_v34 }
  0xf2   : > { %v571_v36 = vmul.f32 %v730_v23, %v533_v32  ;;  %v763_v37 = vpop.f32.mrb[2].mxu1  ;;  %v466_v40 = vadd.f32 %v725_v22, %v451_v33 }
  0xf3   : > { %v588_v39 = vadd.f32 %v731_v27, %v573_v31  ;;  %v574_v41 = vmul.f32 %v763_v37, %v730_v23  ;;  %v536_v42 = vpop.f32.mrb[3].mxu1  ;;  %v464_v44 = vadd.f32 %v725_v22, %v449_v38 }
  0xf4   : > { %v586_v43 = vadd.f32 %v731_v27, %v571_v36  ;;  %v572_v45 = vmul.f32 %v730_v23, %v536_v42 }
  0xf5   : > { %v596_v46 = vadd.f32 %v588_v39, %v465_v30  ;;  %v589_v47 = vadd.f32 %v731_v27, %v574_v41  ;;  %v756_v50 = vpop.f32.mrb[4].mxu0 }
  0xf6   : > { %v594_v48 = vadd.f32 %v586_v43, %v463_v35  ;;  %v587_v49 = vadd.f32 %v731_v27, %v572_v45  ;;  %v454_v53 = vmul.f32 %v756_v50, %v724_v20  ;;  %v426_v54 = vpop.f32.mrb[5].mxu0 }
  0xf7   : > { %v604_v51 = vmax.f32 %v596_v46, 0.0  ;;  %v597_v52 = vadd.f32 %v589_v47, %v466_v40  ;;  %v452_v58 = vmul.f32 %v724_v20, %v426_v54  ;;  %v757_v59 = vpop.f32.mrb[6].mxu0 }
  0xf8   : > { %v602_v55 = vmax.f32 %v594_v48, 0.0  ;;  %v595_v56 = vadd.f32 %v587_v49, %v464_v44  ;;  %v766_v57 = vpop.f32.mrb[4].mxu1  ;;  %v469_v61 = vadd.f32 %v725_v22, %v454_v53  ;;  %v455_v0 = vmul.f32 %v757_v59, %v724_v20  ;;  %v429_v1 = vpop.f32.mrb[7].mxu0 }
  0xf9   : > { %613 = vst.msk [vmem:[%s1011_s10 + $0x10] sm:$0xff] %vm610_vm2, %v604_v51  ;;  %v605_v60 = vmax.f32 %v597_v52, 0.0  ;;  %v577_v62 = vmul.f32 %v766_v57, %v730_v23  ;;  %v549_v63 = vpop.f32.mrb[5].mxu1  ;;  %v467_v3 = vadd.f32 %v725_v22, %v452_v58  ;;  %v453_v6 = vmul.f32 %v724_v20, %v429_v1 }
  0xfa   : > { %611 = vst.msk [vmem:[%s1011_s10] sm:$0xff] %vm610_vm2, %v602_v55  ;;  %v603_v2 = vmax.f32 %v595_v56, 0.0  ;;  %v575_v4 = vmul.f32 %v730_v23, %v549_v63  ;;  %v767_v5 = vpop.f32.mrb[6].mxu1  ;;  %v470_v8 = vadd.f32 %v725_v22, %v455_v0 }
  0xfb   : > { %614 = vst.msk [vmem:[%s1011_s10 + $0x18] sm:$0xff] %vm610_vm2, %v605_v60  ;;  %v592_v7 = vadd.f32 %v731_v27, %v577_v62  ;;  %v578_v9 = vmul.f32 %v767_v5, %v730_v23  ;;  %v552_v10 = vpop.f32.mrb[7].mxu1  ;;  %v468_v12 = vadd.f32 %v725_v22, %v453_v6 }
  0xfc   : > { %612 = vst.msk [vmem:[%s1011_s10 + $0x8] sm:$0xff] %vm610_vm2, %v603_v2  ;;  %v590_v11 = vadd.f32 %v731_v27, %v575_v4  ;;  %v576_v13 = vmul.f32 %v730_v23, %v552_v10 }
  0xfd   : > { %v600_v14 = vadd.f32 %v592_v7, %v469_v61  ;;  %v593_v15 = vadd.f32 %v731_v27, %v578_v9 }
  0xfe   : > { %v598_v16 = vadd.f32 %v590_v11, %v467_v3  ;;  %v591_v17 = vadd.f32 %v731_v27, %v576_v13 }
  0xff   : > { %v608_v18 = vmax.f32 %v600_v14, 0.0  ;;  %v601_v19 = vadd.f32 %v593_v15, %v470_v8 }
 0x100   : > { %v606_v20 = vmax.f32 %v598_v16, 0.0  ;;  %v599_v21 = vadd.f32 %v591_v17, %v468_v12 }
 0x101   : > { %617 = vst.msk [vmem:[%s1011_s10 + $0x30] sm:$0xff] %vm610_vm2, %v608_v18  ;;  %v609_v24 = vmax.f32 %v601_v19, 0.0 }
 0x102   : > { %615 = vst.msk [vmem:[%s1011_s10 + $0x20] sm:$0xff] %vm610_vm2, %v606_v20  ;;  %v607_v22 = vmax.f32 %v599_v21, 0.0 }
 0x103   : > { %618 = vst.msk [vmem:[%s1011_s10 + $0x38] sm:$0xff] %vm610_vm2, %v609_v24 }
 0x104   : > { %616 = vst.msk [vmem:[%s1011_s10 + $0x28] sm:$0xff] %vm610_vm2, %v607_v22 }
 0x105   : > { %828 = shalt.err (!%p825_p3)
}
 0x106   : > { %s829_s23 = scalar_lea.hbm %s1028_s19, 1024  ;;  %s833_s10 = scalar_lea.hbm %s1089_s8, 2048 }
 0x107   : > { %p830_p4 = scmp.ne.s32.totalorder %s1028_s19, %s829_s23  ;;  %p834_p9 = scmp.lt.u32.totalorder %s1028_s19, %s1089_s8 }
 0x108   : > { %p835_p10 = scmp.lt.u32.totalorder %s833_s10, %s829_s23  ;;  %p837_p12 = scmp.lt.u32.totalorder %s829_s23, %s1028_s19 }
 0x109   : > { %p831_p7 = pnand %p830_p4, %p965_p5 }
 0x10a   : > { %p836_p11 = por %p835_p10, %p834_p9 }
 0x10b   : > { %p832_p8 = pneg %p831_p7 }
 0x10c   : > { %p838_p13 = por %p837_p12, %p836_p11 }
 0x10e   : > { %p839_p0 = pnand %p838_p13, %p832_p8 }
 0x110   : > { %842 = shalt.err (!%p839_p0)
}
 0x111   : > { %s880_s18 = smov 128   ;;  %s881_s20 = smov 8  }
 0x112   : > { %770 = dma.vmem_to_hbm [thread:$0]  (%p965_p5), %s1030_s13, 1024, %s1028_s19, %s1040_s9, %s880_s18, %s880_s18, %s881_s20  }
 0x113 PF: > { %p776_p1 = scmp.ge.s32.totalorder %s877_s30, 2  ;;  %s648_s21 = sand.u32 1, %s865_s27  }
 0x114   : > { %s649_s22 = scalar_lea.sflag [#allocation3], %s648_s21 }
 0x115   : > { %p773_p2 = pnand %p776_p1, %p969_p6 }
 0x117   : > { %860 = dma.done.wait (!%p773_p2), %s649_s22, 1024  }
 0x118   : > { %862 = vsyncadd (!%p773_p2), %s649_s22, 4294966272  ;;  %p18_p3 = scmp.ge.s32.totalorder %s952_s11, 4   ;;  %s1092_s27 = smov %s869_s28 }
 0x119   : > { %s1093_s28 = smov %s873_s29  ;;  %s1094_s29 = smov %s963_s14 }
 0x11a   : > { %s1095_s30 = smov %s952_s11  ;;  %20 = sbr.rel (!%p18_p3) target bundleno = 3 (0x3), region = 90 }
 0x121   :  { %654 = vsyncpa [#allocation3], 1 }
 0x122   :  { %656 = vsyncpa [#allocation3 + $0x1], 1 }

// kernel: bottleneck_forward.4
= control target key start
LH: loop header
LB: loop body
LE: loop exit
PB: predicated region body
PF: predicated region fallthrough
CT: control target
= control target key end

     0   :  { %s1133_s15 = smov 0   ;;  %s1135_s16 = smov 0   ;;  %s1297_s0 = inlined_call_operand.vmem [shape: bf16[2,4,9,9,4], index: 0, kind: input, shape index: {}]   ;;  %s1298_s1 = inlined_call_operand.vmem [shape: bf16[36,4], index: 1, kind: input, shape index: {}]   ;;  %s1299_s2 = inlined_call_operand.vmem [shape: f32[1,4], index: 2, kind: input, shape index: {}]   ;;  %s1300_s3 = inlined_call_operand.vmem [shape: f32[1,4], index: 3, kind: input, shape index: {}]   ;;  %s1301_s4 = inlined_call_operand.vmem [shape: bf16[2,64,4], index: 4, kind: output, shape index: {}]  }
   0x1   :  { %s1137_s17 = smov 0   ;;  %s1139_s18 = smov 0  }
   0x2   :  { %s1141_s19 = smov 0  }
   0x3 LB: > { %s23_s20 = sadd.s32 1, %s1090_s17  ;;  %s26_s21 = sadd.s32 1, %s1094_s18  ;;  %s1098_s19 = sphi %s1141_s19, %s14_s19   ;;  %s1094_s18 = sphi %s1139_s18, %s1305_s18   ;;  %s1090_s17 = sphi %s1137_s17, %s1304_s17   ;;  %s1086_s16 = sphi %s1135_s16, %s1303_s16   ;;  %s1082_s15 = sphi %s1133_s15, %s1302_s15  }
   0x4   : > { %p24_p0 = scmp.ge.s32.totalorder %s23_s20, 2  ;;  %p854_p1 = scmp.ge.s32.totalorder %s1098_s19, 1 }
   0x5   : > { %p176_p2 = scmp.lt.s32.totalorder %s1098_s19, 5 }
   0x6   : > { %s1307_s20 = smov (%p24_p0, %s23_s20), 0  ;;  %s1309_s21 = smov (!%p24_p0, %s26_s21), %s1094_s18 }
   0x7   : > { %p177_p3 = pnand %p854_p1, %p176_p2  ;;  %p28_p4 = scmp.ge.s32.totalorder %s1309_s21, 2 }
   0x8   : > { %p206_p5 = scmp.lt.s32.totalorder (!%p177_p3), %s1086_s16, 1  ;;  %s949_s23 = sshll.u32 (!%p177_p3), %s1082_s15, 5  ;;  %vm643_vm0 = vcmask (!%p177_p3), 1041408   ;;  %vm530_vm1 = vcmask (!%p177_p3), 31744   ;;  %vm543_vm2 = vcmask (!%p177_p3), 64512   ;;  %vm552_vm3 = vcmask (!%p177_p3), 97280  }
   0x9   : > { %s1311_s21 = smov (%p28_p4, %s1309_s21), 0  ;;  %180 = sbr.rel (%p177_p3) target bundleno = 424 (0x1a8), region = 36 }
   0xa   : > { %s1100_s28 = smov (!%p177_p3), 4   ;;  %s1101_s29 = smov (!%p177_p3), 12   ;;  %vm561_vm4 = vcmask (!%p177_p3), 130048   ;;  %vm570_vm5 = vcmask (!%p177_p3), 162816   ;;  %vm579_vm6 = vcmask (!%p177_p3), 195584   ;;  %vm588_vm7 = vcmask (!%p177_p3), 228352  }
   0xb   : > { %s1102_s30 = smov (!%p177_p3), 8   ;;  %s1103_s5 = smov (!%p177_p3), 16   ;;  %vm597_vm8 = vcmask (!%p177_p3), 261120   ;;  %vm636_vm9 = vcmask (!%p177_p3), 293888   ;;  %vm738_vm10 = vcmask (!%p177_p3), 27648  }
   0xc   : > { %s1104_s6 = smov (!%p177_p3), 20   ;;  %s1105_s9 = smov (!%p177_p3), 24  }
   0xd   : > { %s1106_s14 = smov (!%p177_p3), 28  }
  0x10   : > { %s1313_s16 = smov (!%p206_p5, %s1086_s16), 1 }
  0x11   : > { %s976_s22 = smul.u32 288, %s1313_s16  ;;  %s857_s24 = sshll.u32 %s1313_s16, 3 }
  0x13   : > { %s210_s26 = scalar_lea.vmem %s1297_s0, %s976_s22  ;;  %s1107_s22 = smov 32  }
  0x14   : > { %s1172_s27 = scalar_lea.vmem %s210_s26, %s949_s23  ;;  %s856_s23 = sshll.u32 %s1082_s15, 2 }
  0x15   : > { %v1025_v0 = vld [vmem:[%s1172_s27 + $0x58] ss:$0 sps:$4 sm:$0xff]   ;;  %v1026_v1 = vld [vmem:[%s1172_s27 + $0x48] ss:$0 sps:$4 sm:$0xff]   ;;  %v1027_v2 = vld [vmem:[%s1172_s27 + $0x60] ss:$0 sps:$4 sm:$0xff]  }
  0x16   : > { %294 = vrot.lane.b32.xlu1 %v1025_v0, %s1100_s28  ;;  %290 = vrot.lane.b32.xlu0 %v1026_v1, %s1100_s28  ;;  %v1028_v3 = vld [vmem:[%s1172_s27 + $0x50] ss:$0 sps:$4 sm:$0xff]   ;;  %v871_v4 = vld [vmem:[%s1172_s27 + $0x98] sm:$0xf]  ;;  %p214_p6 = scmp.lt.s32.totalorder %s856_s23, 7 }
  0x17   : > { %v870_v5 = vld [vmem:[%s1172_s27 + $0x90] sm:$0xf]  ;;  %v1181_v6 = vld [vmem:[%s1172_s27 + $0x8] sm:$0xf]  ;;  %v238_v7 = vld [vmem:[%s1172_s27 + $0xc] sm:$0x1]  ;;  %v910_v13 = vcombine.low %v871_v4, %v871_v4 }
  0x18   : > { %v1185_v8 = vld [vmem:[%s1172_s27] sm:$0xf]  ;;  %v906_v9 = vcombine.low %v1181_v6, %v238_v7  ;;  %v237_v10 = vld [vmem:[%s1172_s27 + $0x4] sm:$0x1]  ;;  %v1190_v11 = vld [vmem:[%s1172_s27 + $0x18] sm:$0xf]  ;;  %v909_v18 = vcombine.low %v870_v5, %v870_v5 }
  0x19   : > { %v240_v12 = vld [vmem:[%s1172_s27 + $0x1c] sm:$0x1]  ;;  %v905_v14 = vcombine.low %v1185_v8, %v237_v10  ;;  %v1196_v16 = vld [vmem:[%s1172_s27 + $0x10] sm:$0xf]  ;;  %v239_v17 = vld [vmem:[%s1172_s27 + $0x14] sm:$0x1] }
  0x1a   : > { %296 = vrot.lane.b32.xlu1 %v1027_v2, %s1100_s28  ;;  %v908_v15 = vcombine.low %v1190_v11, %v240_v12  ;;  %292 = vrot.lane.b32.xlu0 %v1028_v3, %s1100_s28  ;;  %v326_v19 = vshrl.u32 %v906_v9, 16  ;;  %v328_v20 = vshll.u32 %v906_v9, 16  ;;  %v907_v21 = vcombine.low %v1196_v16, %v239_v17  ;;  %v881_v35 = vld [vmem:[%s1172_s27 + $0x9c] sm:$0x1]  ;;  %v873_v37 = vld [vmem:[%s1172_s27 + $0xa8] sm:$0xf] }
  0x1b   : > { %v319_v22 = vshrl.u32 %v905_v14, 16  ;;  %v321_v23 = vshll.u32 %v905_v14, 16  ;;  %v880_v38 = vld [vmem:[%s1172_s27 + $0x94] sm:$0x1]  ;;  %v872_v39 = vld [vmem:[%s1172_s27 + $0xa0] sm:$0xf]  ;;  %v918_v40 = vcombine.low %v871_v4, %v881_v35  ;;  %v912_v41 = vcombine.low %v873_v37, %v873_v37 }
  0x1c   : > { %v342_v24 = vshll.u32 %v908_v15, 16  ;;  %v330_v25 = vrot.slane %v328_v20, 1  ;;  %v335_v26 = vshll.u32 %v907_v21, 16  ;;  %v340_v28 = vshrl.u32 %v908_v15, 16  ;;  %v883_v43 = vld [vmem:[%s1172_s27 + $0xac] sm:$0x1] }
  0x1d   : > { %v323_v27 = vrot.slane %v321_v23, 1  ;;  %v333_v31 = vshrl.u32 %v907_v21, 16  ;;  %v917_v42 = vcombine.low %v870_v5, %v880_v38  ;;  %v911_v44 = vcombine.low %v872_v39, %v872_v39  ;;  %v882_v45 = vld [vmem:[%s1172_s27 + $0xa4] sm:$0x1]  ;;  %v1041_v47 = vld [vmem:[%s1172_s27 + $0xe0] ss:$0 sps:$4 sm:$0xff]  }
  0x1e   : > { %368 = vrot.lane.b32.xlu1 %v910_v13, %s1101_s29  ;;  %v344_v29 = vrot.slane %v342_v24, 1  ;;  %366 = vrot.lane.b32.xlu0 %v909_v18, %s1101_s29  ;;  %v331_v30 = vor.u32 %v330_v25, %v326_v19  ;;  %v337_v32 = vrot.slane %v335_v26, 1  ;;  %v920_v46 = vcombine.low %v873_v37, %v883_v43  ;;  %v1042_v50 = vld [vmem:[%s1172_s27 + $0xd8] ss:$0 sps:$4 sm:$0xff]   ;;  %v1043_v52 = vld [vmem:[%s1172_s27 + $0xf0] ss:$0 sps:$4 sm:$0xff]  }
  0x1f   : > { %v324_v33 = vor.u32 %v323_v27, %v319_v22  ;;  %v416_v48 = vshll.u32 %v918_v40, 16  ;;  %v919_v49 = vcombine.low %v872_v39, %v882_v45  ;;  %v409_v51 = vshll.u32 %v917_v42, 16  ;;  %v1044_v56 = vld [vmem:[%s1172_s27 + $0xe8] ss:$0 sps:$4 sm:$0xff]   ;;  %v887_v4 = vld [vmem:[%s1172_s27 + $0x10] sm:$0xf] }
  0x20   : > { %v345_v34 = vor.u32 %v344_v29, %v340_v28  ;;  %v338_v36 = vor.u32 %v337_v32, %v333_v31  ;;  %v414_v53 = vshrl.u32 %v918_v40, 16  ;;  %v430_v55 = vshll.u32 %v920_v46, 16  ;;  %v886_v5 = vld [vmem:[%s1172_s27 + $0x8] sm:$0xf]  ;;  %v1057_v9 = vld [vmem:[%s1298_s1] sm:$0xff]   ;;  %s1315_s23 = smov (!%p214_p6, %s856_s23), 7 }
  0x21   : > { %v418_v54 = vrot.slane %v416_v48, 1  ;;  %v407_v57 = vshrl.u32 %v917_v42, 16  ;;  %v411_v58 = vrot.slane %v409_v51, 1  ;;  %v423_v59 = vshll.u32 %v919_v49, 16  ;;  %v898_v10 = vld [vmem:[%s1172_s27 + $0x14] sm:$0x1]  ;;  %965 = vmatprep.subr.bf16.mxu0 %v1057_v9 }
  0x22   : > { %348 = vrot.lane.b32.xlu1 %v331_v30, %s1102_s30  ;;  %346 = vrot.lane.b32.xlu0 %v324_v33, %s1102_s30  ;;  %v428_v61 = vshrl.u32 %v920_v46, 16  ;;  %v432_v62 = vrot.slane %v430_v55, 1  ;;  %v421_v0 = vshrl.u32 %v919_v49, 16  ;;  %v922_v7 = vcombine.low %v887_v4, %v887_v4  ;;  %v889_v13 = vld [vmem:[%s1172_s27 + $0x20] sm:$0xf]  ;;  %v1058_v19 = vld [vmem:[%s1298_s1 + $0x8] sm:$0xff]  }
  0x23   : > { %v419_v60 = vor.u32 %v418_v54, %v414_v53  ;;  %v412_v63 = vor.u32 %v411_v58, %v407_v57  ;;  %v425_v1 = vrot.slane %v423_v59, 1  ;;  %v921_v12 = vcombine.low %v886_v5, %v886_v5  ;;  %v897_v14 = vld [vmem:[%s1172_s27 + $0xc] sm:$0x1]  ;;  %v888_v15 = vld [vmem:[%s1172_s27 + $0x18] sm:$0xf]  ;;  %966 = vmatpush3.bf16.msra.mxu0 %v1057_v9 }
  0x24   : > { %v433_v2 = vor.u32 %v432_v62, %v428_v61  ;;  %v930_v17 = vcombine.low %v887_v4, %v898_v10  ;;  %v924_v18 = vcombine.low %v889_v13, %v889_v13  ;;  %v929_v20 = vcombine.low %v886_v5, %v897_v14  ;;  %v900_v21 = vld [vmem:[%s1172_s27 + $0x24] sm:$0x1]  ;;  %v899_v23 = vld [vmem:[%s1172_s27 + $0x1c] sm:$0x1]  ;;  %967 = vmatprep.subr.bf16.mxu0 %v1058_v19  ;;  %v1053_v24 = vld [vmem:[%s1172_s27 + $0x58] ss:$0 sps:$4 sm:$0xff]  }
  0x25   : > { %v426_v3 = vor.u32 %v425_v1, %v421_v0  ;;  %v923_v22 = vcombine.low %v888_v15, %v888_v15  ;;  %v932_v25 = vcombine.low %v889_v13, %v900_v21  ;;  %v1059_v27 = vld [vmem:[%s1298_s1 + $0x10] ss:$0 sps:$4 sm:$0x33]   ;;  %v931_v28 = vcombine.low %v888_v15, %v899_v23  ;;  %v1055_v32 = vld [vmem:[%s1172_s27 + $0x68] ss:$0 sps:$4 sm:$0xff]  }
  0x26   : > { %352 = vrot.lane.b32.xlu1 %v345_v34, %s1102_s30  ;;  %350 = vrot.lane.b32.xlu0 %v338_v36, %s1102_s30  ;;  %v504_v26 = vshll.u32 %v930_v17, 16  ;;  %v1054_v29 = vld [vmem:[%s1172_s27 + $0x50] ss:$0 sps:$4 sm:$0xff]   ;;  %v497_v30 = vshll.u32 %v929_v20, 16  ;;  %v645_v31 = vsel %vm643_vm0, %v1059_v27, 0  ;;  %v502_v33 = vshrl.u32 %v930_v17, 16 }
  0x27   : > { %968 = vmatpush3.bf16.msra.mxu0 %v1058_v19  ;;  %v518_v35 = vshll.u32 %v932_v25, 16  ;;  %v1056_v36 = vld [vmem:[%s1172_s27 + $0x60] ss:$0 sps:$4 sm:$0xff]   ;;  %v495_v37 = vshrl.u32 %v929_v20, 16  ;;  %v511_v39 = vshll.u32 %v931_v28, 16  ;;  %s217_s27 = sadd.s32 %s857_s24, %s1315_s23 }
  0x28   : > { %975 = vmatprep.subr.msk.bf16.mxu0 %vm643_vm0, %v1059_v27  ;;  %v506_v34 = vrot.slane %v504_v26, 1  ;;  %v499_v38 = vrot.slane %v497_v30, 1  ;;  %s858_s30 = sshll.u32 %s217_s27, 2 }
  0x29   : > { %v520_v42 = vrot.slane %v518_v35, 1  ;;  %v513_v45 = vrot.slane %v511_v39, 1 }
  0x2a   : > { %372 = vrot.lane.b32.xlu1 %v912_v41, %s1101_s29  ;;  %370 = vrot.lane.b32.xlu0 %v911_v44, %s1101_s29  ;;  %v507_v40 = vor.u32 %v506_v34, %v502_v33  ;;  %v516_v41 = vshrl.u32 %v932_v25, 16  ;;  %v500_v43 = vor.u32 %v499_v38, %v495_v37  ;;  %v509_v44 = vshrl.u32 %v931_v28, 16 }
  0x2b   : > { %970 = vmatpush3.bf16.msra.mxu0 %v645_v31 }
  0x2c   : > { %v521_v46 = vor.u32 %v520_v42, %v516_v41 }
  0x2e   : > { %388 = vrot.lane.b32.xlu1 %v1041_v47, %s1103_s5  ;;  %386 = vrot.lane.b32.xlu0 %v1042_v50, %s1103_s5  ;;  %v514_v47 = vor.u32 %v513_v45, %v509_v44 }
  0x32   : > { %392 = vrot.lane.b32.xlu1 %v1043_v52, %s1103_s5  ;;  %390 = vrot.lane.b32.xlu0 %v1044_v56, %s1103_s5  ;;  %s219_s5 = scalar_lea.vmem %s1301_s4, %s858_s30 }
  0x36   : > { %436 = vrot.lane.b32.xlu1 %v419_v60, %s1104_s6  ;;  %434 = vrot.lane.b32.xlu0 %v412_v63, %s1104_s6 }
  0x3a   : > { %440 = vrot.lane.b32.xlu1 %v433_v2, %s1104_s6  ;;  %438 = vrot.lane.b32.xlu0 %v426_v3, %s1104_s6 }
  0x3e   : > { %456 = vrot.lane.b32.xlu1 %v922_v7, %s1105_s9  ;;  %454 = vrot.lane.b32.xlu0 %v921_v12, %s1105_s9 }
  0x42   : > { %460 = vrot.lane.b32.xlu1 %v924_v18, %s1105_s9  ;;  %458 = vrot.lane.b32.xlu0 %v923_v22, %s1105_s9 }
  0x46   : > { %476 = vrot.lane.b32.xlu1 %v1053_v24, %s1106_s14  ;;  %474 = vrot.lane.b32.xlu0 %v1054_v29, %s1106_s14 }
  0x4a   : > { %480 = vrot.lane.b32.xlu1 %v1055_v32, %s1106_s14  ;;  %478 = vrot.lane.b32.xlu0 %v1056_v36, %s1106_s14 }
  0x4e   : > { %524 = vrot.lane.b32.xlu1 %v507_v40, %s1107_s22  ;;  %522 = vrot.lane.b32.xlu0 %v500_v43, %s1107_s22 }
  0x52   : > { %528 = vrot.lane.b32.xlu1 %v521_v46, %s1107_s22  ;;  %526 = vrot.lane.b32.xlu0 %v514_v47, %s1107_s22 }
  0x88   : > { %v295_v48 = vpop.permute.xlu1 %294  ;;  %v291_v49 = vpop.permute.xlu0 %290 }
  0x89   : > { %v533_v13 = vsel %vm530_vm1, %v1185_v8, %v291_v49  ;;  %v539_v24 = vsel %vm530_vm1, %v1196_v16, %v295_v48 }
  0x8c   : > { %v297_v50 = vpop.permute.xlu1 %296  ;;  %v293_v51 = vpop.permute.xlu0 %292 }
  0x8d   : > { %v536_v10 = vsel %vm530_vm1, %v1181_v6, %v293_v51  ;;  %v542_v8 = vsel %vm530_vm1, %v1190_v11, %v297_v50  ;;  %v940_v50 = vld [vmem:[%s1299_s2] ss:$0 sm:$0xff] }
  0x90   : > { %v369_v52 = vpop.permute.xlu1 %368  ;;  %v367_v53 = vpop.permute.xlu0 %366 }
  0x94   : > { %v349_v54 = vpop.permute.xlu1 %348  ;;  %v347_v55 = vpop.permute.xlu0 %346 }
  0x95   : > { %v547_v14 = vsel %vm543_vm2, %v536_v10, %v349_v54  ;;  %v545_v17 = vsel %vm543_vm2, %v533_v13, %v347_v55 }
  0x96   : > { %v556_v18 = vsel %vm552_vm3, %v547_v14, %v369_v52  ;;  %v554_v6 = vsel %vm552_vm3, %v545_v17, %v367_v53  ;;  %v941_v52 = vld [vmem:[%s1300_s3] ss:$0 sm:$0xff] }
  0x98   : > { %v353_v56 = vpop.permute.xlu1 %352  ;;  %v351_v57 = vpop.permute.xlu0 %350 }
  0x99   : > { %v551_v25 = vsel %vm543_vm2, %v542_v8, %v353_v56  ;;  %v549_v28 = vsel %vm543_vm2, %v539_v24, %v351_v57 }
  0x9c   : > { %v373_v58 = vpop.permute.xlu1 %372  ;;  %v371_v59 = vpop.permute.xlu0 %370 }
  0x9d   : > { %v560_v29 = vsel %vm552_vm3, %v551_v25, %v373_v58  ;;  %v558_v32 = vsel %vm552_vm3, %v549_v28, %v371_v59 }
  0xa0   : > { %v389_v60 = vpop.permute.xlu1 %388  ;;  %v387_v61 = vpop.permute.xlu0 %386 }
  0xa1   : > { %v565_v20 = vsel %vm561_vm4, %v556_v18, %v389_v60  ;;  %v563_v22 = vsel %vm561_vm4, %v554_v6, %v387_v61 }
  0xa4   : > { %v393_v62 = vpop.permute.xlu1 %392  ;;  %v391_v63 = vpop.permute.xlu0 %390 }
  0xa5   : > { %v569_v33 = vsel %vm561_vm4, %v560_v29, %v393_v62  ;;  %v567_v36 = vsel %vm561_vm4, %v558_v32, %v391_v63 }
  0xa8   : > { %v437_v0 = vpop.permute.xlu1 %436  ;;  %v435_v1 = vpop.permute.xlu0 %434 }
  0xa9   : > { %v574_v23 = vsel %vm570_vm5, %v565_v20, %v437_v0  ;;  %v572_v26 = vsel %vm570_vm5, %v563_v22, %v435_v1 }
  0xac   : > { %v441_v2 = vpop.permute.xlu1 %440  ;;  %v439_v3 = vpop.permute.xlu0 %438 }
  0xad   : > { %v578_v37 = vsel %vm570_vm5, %v569_v33, %v441_v2  ;;  %v576_v39 = vsel %vm570_vm5, %v567_v36, %v439_v3 }
  0xb0   : > { %v457_v4 = vpop.permute.xlu1 %456  ;;  %v455_v5 = vpop.permute.xlu0 %454 }
  0xb1   : > { %v583_v27 = vsel %vm579_vm6, %v574_v23, %v457_v4  ;;  %v581_v11 = vsel %vm579_vm6, %v572_v26, %v455_v5 }
  0xb4   : > { %v461_v7 = vpop.permute.xlu1 %460  ;;  %v459_v9 = vpop.permute.xlu0 %458 }
  0xb5   : > { %v587_v40 = vsel %vm579_vm6, %v578_v37, %v461_v7  ;;  %v585_v42 = vsel %vm579_vm6, %v576_v39, %v459_v9 }
  0xb8   : > { %v477_v12 = vpop.permute.xlu1 %476  ;;  %v475_v15 = vpop.permute.xlu0 %474 }
  0xb9   : > { %v592_v30 = vsel %vm588_vm7, %v583_v27, %v477_v12  ;;  %v590_v16 = vsel %vm588_vm7, %v581_v11, %v475_v15 }
  0xbc   : > { %v481_v19 = vpop.permute.xlu1 %480  ;;  %v479_v21 = vpop.permute.xlu0 %478 }
  0xbd   : > { %v596_v43 = vsel %vm588_vm7, %v587_v40, %v481_v19  ;;  %v594_v45 = vsel %vm588_vm7, %v585_v42, %v479_v21 }
  0xc0   : > { %v525_v31 = vpop.permute.xlu1 %524  ;;  %v523_v35 = vpop.permute.xlu0 %522 }
  0xc1   : > { %v601_v34 = vsel %vm597_vm8, %v592_v30, %v525_v31  ;;  %v599_v38 = vsel %vm597_vm8, %v590_v16, %v523_v35 }
  0xc2   : > { %v933_v41 = vcombine.low %v599_v38, %v601_v34 }
  0xc4   : > { %v529_v44 = vpop.permute.xlu1 %528  ;;  %971 = vmatprep.mubr.msk.bf16.mxu0 %vm636_vm9, %v933_v41  ;;  %v527_v47 = vpop.permute.xlu0 %526 }
  0xc5   : > { %v605_v46 = vsel %vm597_vm8, %v596_v43, %v529_v44  ;;  %v603_v48 = vsel %vm597_vm8, %v594_v45, %v527_v47 }
  0xc6   : > { %v934_v49 = vcombine.low %v603_v48, %v605_v46 }
  0xc8   : > { %972 = vmatmul.mubr.msk.bf16.vlgmr.msra.gmra.mrb[0].mxu0 %vm636_vm9, %v934_v49 }
 0x19b   : > { %v973_v51 = vpop.f32.mrb[0].mxu0 }
 0x19c   : > { %v705_v53 = vmul.f32 %v973_v51, %v940_v50  ;;  %v681_v54 = vpop.f32.mrb[1].mxu0 }
 0x19d   : > { %v703_v55 = vmul.f32 %v940_v50, %v681_v54  ;;  %v974_v56 = vpop.f32.mrb[2].mxu0 }
 0x19e   : > { %v716_v57 = vadd.f32 %v941_v52, %v705_v53  ;;  %v706_v58 = vmul.f32 %v974_v56, %v940_v50  ;;  %v684_v59 = vpop.f32.mrb[3].mxu0 }
 0x19f   : > { %v714_v60 = vadd.f32 %v941_v52, %v703_v55  ;;  %v704_v61 = vmul.f32 %v940_v50, %v684_v59 }
 0x1a0   : > { %v720_v62 = vmax.f32 %v716_v57, 0.0  ;;  %v717_v63 = vadd.f32 %v941_v52, %v706_v58 }
 0x1a1   : > { %v718_v0 = vmax.f32 %v714_v60, 0.0  ;;  %v715_v1 = vadd.f32 %v941_v52, %v704_v61 }
 0x1a2   : > { %v958_v2 = vpack.c.bf16 %v720_v62, %v720_v62  ;;  %v721_v3 = vmax.f32 %v717_v63, 0.0 }
 0x1a3   : > { %v956_v4 = vpack.c.bf16 %v718_v0, %v718_v0  ;;  %v719_v5 = vmax.f32 %v715_v1, 0.0 }
 0x1a4   : > { %741 = vst.msk [vmem:[%s219_s5 + $0x8] sm:$0xf] %vm738_vm10, %v958_v2  ;;  %v959_v7 = vpack.c.bf16 %v721_v3, %v721_v3 }
 0x1a5   : > { %739 = vst.msk [vmem:[%s219_s5] sm:$0xf] %vm738_vm10, %v956_v4  ;;  %v957_v9 = vpack.c.bf16 %v719_v5, %v719_v5 }
 0x1a6   : > { %742 = vst.msk [vmem:[%s219_s5 + $0xc] sm:$0xf] %vm738_vm10, %v959_v7 }
 0x1a7   : > { %740 = vst.msk [vmem:[%s219_s5 + $0x4] sm:$0xf] %vm738_vm10, %v957_v9 }
 0x1a8 PF: > { %s14_s19 = sadd.s32 1, %s1098_s19   ;;  %s1302_s15 = smov %s1090_s17 }
 0x1a9   : > { %p11_p7 = scmp.ge.s32.totalorder %s14_s19, 6   ;;  %s1303_s16 = smov %s1094_s18 }
 0x1aa   : > { %s1304_s17 = smov %s1307_s20  ;;  %s1305_s18 = smov %s1311_s21 }
 0x1ab   :  { %13 = sbr.rel (!%p11_p7) target bundleno = 3 (0x3), region = 72 }

</bundles_post_ra>
